<compile_context>
chip_gen: v6e
topology: v6e:2x2x1
jax: 0.10.0
libtpu: 0.0.40
codegen_flags: <defaults>
</compile_context>

<pallas_src>
import jax
import jax.numpy as jnp
from jax.experimental import pallas as pl
from jax.experimental.pallas import tpu as pltpu


def _gru_bidir_cell(x, h_all, wih, whh, bi, bhn):
    """One bidirectional GRU-cell step (both directions, PyTorch gate order r,z,n).

    x:     (1, H)      f32  embedded token (shared by both directions)
    h_all: (2, 1, H)   f32  previous hidden state per direction
    wih:   (2, H, 3H)  bf16 input->gates weights (pre-transposed for x @ W)
    whh:   (2, H, 3H)  bf16 hidden->gates weights
    bi:    (2, 1, 3H)  f32  [b_ih_r + b_hh_r, b_ih_z + b_hh_z, b_ih_n]
    bhn:   (2, 1, H)   f32  b_hh_n (kept separate: lives inside r * (...))

    Returns (h_new (2, 1, H) f32, out (1, 2H) f32 = concat(h_fwd, h_bwd)).
    """
    H = x.shape[-1]
    x_bf = x.astype(jnp.bfloat16)
    hs = []
    for d in range(2):                       # unrolled at trace time
        h = h_all[d]                         # (1, H) f32
        gi = jnp.dot(x_bf, wih[d], preferred_element_type=jnp.float32) + bi[d]
        gh = jnp.dot(h.astype(jnp.bfloat16), whh[d],
                     preferred_element_type=jnp.float32)
        # gate slices are lane-aligned because H % 128 == 0
        r = jax.nn.sigmoid(gi[:, :H] + gh[:, :H])
        z = jax.nn.sigmoid(gi[:, H:2 * H] + gh[:, H:2 * H])
        n = jnp.tanh(gi[:, 2 * H:] + r * (gh[:, 2 * H:] + bhn[d]))
        hs.append((1.0 - z) * n + z * h)
    h_new = jnp.stack(hs, axis=0)            # (2, 1, H)
    out = jnp.concatenate(hs, axis=1)        # (1, 2H) lane-dense
    return h_new, out


# ---------------------------------------------------------------------------
# Single-step kernel: exactly EncoderRNN.forward (one token, both directions)
# ---------------------------------------------------------------------------
def gru_bidir_step_kernel(x_ref, h_ref, wih_ref, whh_ref, bi_ref, bhn_ref,
                          out_ref, hnew_ref):
    h_new, out = _gru_bidir_cell(x_ref[0], h_ref[...], wih_ref[...],
                                 whh_ref[...], bi_ref[...], bhn_ref[...])
    hnew_ref[...] = h_new.astype(hnew_ref.dtype)
    out_ref[...] = out.reshape(out_ref.shape).astype(out_ref.dtype)


def encoder_rnn_forward(token, hidden, params):
    """Equivalent of EncoderRNN.forward(input, hidden) for a single token."""
    H = params["hidden_size"]
    # embedding lookup + .view(1, 1, -1)  (plain-JAX glue on the 1-token path)
    x = params["embedding"][token].reshape(1, 1, H)

    output, h_new = pl.pallas_call(
        gru_bidir_step_kernel,
        out_shape=(jax.ShapeDtypeStruct((1, 1, 2 * H), jnp.float32),
                   jax.ShapeDtypeStruct((2, 1, H), jnp.float32)),
        grid=(1,),
        in_specs=[
            pl.BlockSpec((1, 1, H), lambda i: (0, 0, 0)),          # x
            pl.BlockSpec((2, 1, H), lambda i: (0, 0, 0)),          # hidden
            pl.BlockSpec((2, H, 3 * H), lambda i: (0, 0, 0)),      # W_ih (bf16)
            pl.BlockSpec((2, H, 3 * H), lambda i: (0, 0, 0)),      # W_hh (bf16)
            pl.BlockSpec((2, 1, 3 * H), lambda i: (0, 0, 0)),      # fused bias
            pl.BlockSpec((2, 1, H), lambda i: (0, 0, 0)),          # b_hh_n
        ],
        out_specs=(
            pl.BlockSpec((1, 1, 2 * H), lambda i: (0, 0, 0)),      # concat output
            pl.BlockSpec((2, 1, H), lambda i: (0, 0, 0)),          # new hidden
        ),
        compiler_params=pltpu.CompilerParams(
            dimension_semantics=("arbitrary",)),
    )(x, hidden, params["w_ih"], params["w_hh"], params["b_i"], params["b_hn"])
    return output, h_new


# ---------------------------------------------------------------------------
# Whole-sequence kernel: the encoder time loop runs INSIDE one pallas_call.
# ---------------------------------------------------------------------------
def gru_bidir_seq_kernel(tokens_ref,                    # scalar prefetch (SMEM)
                         x_ref, h0_ref, wih_ref, whh_ref, bi_ref, bhn_ref,
                         out_ref, hlast_ref,
                         h_scratch):
    t = pl.program_id(0)

    @pl.when(t == 0)
    def _():
        h_scratch[...] = h0_ref[...]

    h_new, out = _gru_bidir_cell(x_ref[0], h_scratch[...], wih_ref[...],
                                 whh_ref[...], bi_ref[...], bhn_ref[...])
    h_scratch[...] = h_new
    out_ref[...] = out.reshape(out_ref.shape).astype(out_ref.dtype)
    hlast_ref[...] = h_new.astype(hlast_ref.dtype)


def encoder_rnn_forward_sequence(tokens, hidden0, params):
    """Runs `for t: out[t], h = EncoderRNN.forward(tokens[t], h)` as ONE
    fused Pallas kernel: one launch, one weight read, hidden in VMEM scratch,
    per-step embedding row gathered from HBM via the scalar-prefetched tokens."""
    H = params["hidden_size"]
    T = tokens.shape[0]
    emb3 = params["embedding"].reshape(-1, 1, H)        # (V, 1, H) for row gather

    grid_spec = pltpu.PrefetchScalarGridSpec(
        num_scalar_prefetch=1,
        grid=(T,),
        in_specs=[
            pl.BlockSpec((1, 1, H), lambda t, tok: (tok[t], 0, 0)),  # emb row t
            pl.BlockSpec((2, 1, H), lambda t, tok: (0, 0, 0)),       # h0
            pl.BlockSpec((2, H, 3 * H), lambda t, tok: (0, 0, 0)),   # W_ih resident
            pl.BlockSpec((2, H, 3 * H), lambda t, tok: (0, 0, 0)),   # W_hh resident
            pl.BlockSpec((2, 1, 3 * H), lambda t, tok: (0, 0, 0)),   # fused bias
            pl.BlockSpec((2, 1, H), lambda t, tok: (0, 0, 0)),       # b_hh_n
        ],
        out_specs=(
            pl.BlockSpec((1, 1, 2 * H), lambda t, tok: (t, 0, 0)),   # out[t]
            pl.BlockSpec((2, 1, H), lambda t, tok: (0, 0, 0)),       # final hidden
        ),
        scratch_shapes=[pltpu.VMEM((2, 1, H), jnp.float32)],
    )

    outputs, h_last = pl.pallas_call(
        gru_bidir_seq_kernel,
        out_shape=(jax.ShapeDtypeStruct((T, 1, 2 * H), jnp.float32),
                   jax.ShapeDtypeStruct((2, 1, H), jnp.float32)),
        grid_spec=grid_spec,
        compiler_params=pltpu.CompilerParams(
            dimension_semantics=("arbitrary",)),
    )(tokens.astype(jnp.int32), emb3, hidden0, params["w_ih"], params["w_hh"],
      params["b_i"], params["b_hn"])
    return outputs, h_last


# ---------------------------------------------------------------------------
# Parameters + pure-JAX reference
# ---------------------------------------------------------------------------
def init_params(key, input_size, hidden_size):
    """Parameters matching EncoderRNN (embedding + bidirectional GRU).

    PyTorch stores weight_ih_l0 / weight_hh_l0 as (3H, H); here they are kept
    pre-transposed as (H, 3H) per direction (x @ W) and cast to bf16 for the
    MXU-native path.  Index 0 = forward direction, 1 = reverse direction.
    """
    H = hidden_size
    ks = jax.random.split(key, 5)
    bound = H ** -0.5
    emb = jax.random.normal(ks[0], (input_size, H), jnp.float32)   # N(0,1), as nn.Embedding
    w_ih = jax.random.uniform(ks[1], (2, H, 3 * H), jnp.float32, -bound, bound)
    w_hh = jax.random.uniform(ks[2], (2, H, 3 * H), jnp.float32, -bound, bound)
    b_ih = jax.random.uniform(ks[3], (2, 1, 3 * H), jnp.float32, -bound, bound)
    b_hh = jax.random.uniform(ks[4], (2, 1, 3 * H), jnp.float32, -bound, bound)
    # Host-side precompute: fold b_hh's r/z parts into the input-side bias;
    # keep b_hh_n separate (it must stay inside the r * (...) term).
    b_i = jnp.concatenate([b_ih[..., :2 * H] + b_hh[..., :2 * H],
                           b_ih[..., 2 * H:]], axis=-1)
    b_hn = b_hh[..., 2 * H:]
    return {
        "hidden_size": H,
        "embedding": emb,
        "w_ih": w_ih.astype(jnp.bfloat16),
        "w_hh": w_hh.astype(jnp.bfloat16),
        "b_ih": b_ih,            # raw biases, used only by the reference check
        "b_hh": b_hh,
        "b_i": b_i,              # fused r/z bias + b_ih_n   (kernel input)
        "b_hn": b_hn,            # b_hh_n                     (kernel input)
    }


def reference_step(token, hidden, params):
    """Independent pure-JAX reference in direct PyTorch GRU form (same bf16
    weight/input rounding, f32 accumulation, un-fused biases)."""
    H = params["hidden_size"]
    x = params["embedding"][token].reshape(1, H)
    xb = x.astype(jnp.bfloat16).astype(jnp.float32)
    hs = []
    for d in range(2):
        h = hidden[d]                                            # (1, H)
        hb = h.astype(jnp.bfloat16).astype(jnp.float32)
        wih = params["w_ih"][d].astype(jnp.float32)              # (H, 3H)
        whh = params["w_hh"][d].astype(jnp.float32)
        gi = xb @ wih + params["b_ih"][d]
        gh = hb @ whh + params["b_hh"][d]
        r = jax.nn.sigmoid(gi[:, :H] + gh[:, :H])
        z = jax.nn.sigmoid(gi[:, H:2 * H] + gh[:, H:2 * H])
        n = jnp.tanh(gi[:, 2 * H:] + r * gh[:, 2 * H:])
        hs.append((1.0 - z) * n + z * h)
    h_new = jnp.stack(hs, axis=0)                                # (2, 1, H)
    output = jnp.concatenate(hs, axis=-1).reshape(1, 1, 2 * H)
    return output, h_new


if __name__ == "__main__":
    input_size = 32        # vocab size (small demo)
    hidden_size = 256      # matches the module; keeps gate slices lane-aligned
    seq_len = 8

    key = jax.random.PRNGKey(0)
    params = init_params(key, input_size, hidden_size)

    # --- single-step forward (exact module semantics) ---
    token = jnp.array(3, dtype=jnp.int32)
    hidden0 = jnp.zeros((2, 1, hidden_size), jnp.float32)        # initHidden()

    output, hidden1 = encoder_rnn_forward(token, hidden0, params)
    jax.block_until_ready((output, hidden1))

    ref_out, ref_hid = reference_step(token, hidden0, params)
    assert output.shape == (1, 1, 2 * hidden_size)
    assert hidden1.shape == (2, 1, hidden_size)
    assert jnp.allclose(output, ref_out, atol=2e-3, rtol=2e-3)
    assert jnp.allclose(hidden1, ref_hid, atol=2e-3, rtol=2e-3)

    # --- fused whole-sequence encoder (one launch, weights stay VMEM-resident) ---
    tokens = jax.random.randint(jax.random.PRNGKey(1), (seq_len,), 0,
                                input_size, jnp.int32)
    outs, h_last = encoder_rnn_forward_sequence(tokens, hidden0, params)
    jax.block_until_ready((outs, h_last))

    h = hidden0
    ref_rows = []
    for t in range(seq_len):
        o, h = reference_step(tokens[t], h, params)
        ref_rows.append(o)
    ref_outs = jnp.concatenate(ref_rows, axis=0)                 # (T, 1, 2H)
    assert outs.shape == (seq_len, 1, 2 * hidden_size)
    assert h_last.shape == (2, 1, hidden_size)
    assert jnp.allclose(outs, ref_outs, atol=2e-3, rtol=2e-3)
    assert jnp.allclose(h_last, h, atol=2e-3, rtol=2e-3)

    print("KERNEL_OK")
</pallas_src>

<mosaic_0001>
module attributes {stable_mosaic.version = 11 : i64} {
  func.func @gru_bidir_step_kernel(%arg0: i32, %arg1: memref<1x1x256xf32, #tpu.memory_space<vmem>>, %arg2: memref<2x1x256xf32, #tpu.memory_space<vmem>>, %arg3: memref<2x256x768xbf16, #tpu.memory_space<vmem>>, %arg4: memref<2x256x768xbf16, #tpu.memory_space<vmem>>, %arg5: memref<2x1x768xf32, #tpu.memory_space<vmem>>, %arg6: memref<2x1x256xf32, #tpu.memory_space<vmem>>, %arg7: memref<1x1x512xf32, #tpu.memory_space<vmem>>, %arg8: memref<2x1x256xf32, #tpu.memory_space<vmem>>) attributes {dimension_semantics = [#tpu.dimension_semantics<arbitrary>], iteration_bounds = array<i64: 1>, scalar_prefetch = 0 : i64, scratch_operands = 0 : i64, tpu.core_type = #tpu.core_type<tc>, window_params = [{pipeline_mode = #tpu.pipeline_mode<synchronous>, transform_indices = @transform_0, window_bounds = array<i64: 1, 1, 256>}, {pipeline_mode = #tpu.pipeline_mode<synchronous>, transform_indices = @transform_1, window_bounds = array<i64: 2, 1, 256>}, {pipeline_mode = #tpu.pipeline_mode<synchronous>, transform_indices = @transform_2, window_bounds = array<i64: 2, 256, 768>}, {pipeline_mode = #tpu.pipeline_mode<synchronous>, transform_indices = @transform_3, window_bounds = array<i64: 2, 256, 768>}, {pipeline_mode = #tpu.pipeline_mode<synchronous>, transform_indices = @transform_4, window_bounds = array<i64: 2, 1, 768>}, {pipeline_mode = #tpu.pipeline_mode<synchronous>, transform_indices = @transform_5, window_bounds = array<i64: 2, 1, 256>}, {pipeline_mode = #tpu.pipeline_mode<synchronous>, transform_indices = @transform_6, window_bounds = array<i64: 1, 1, 512>}, {pipeline_mode = #tpu.pipeline_mode<synchronous>, transform_indices = @transform_7, window_bounds = array<i64: 2, 1, 256>}]} {
    %c0 = arith.constant 0 : index
    %c0_0 = arith.constant 0 : index
    %c0_1 = arith.constant 0 : index
    %0 = vector.load %arg1[%c0, %c0_0, %c0_1] : memref<1x1x256xf32, #tpu.memory_space<vmem>>, vector<1x1x256xf32>
    %1 = vector.shape_cast %0 : vector<1x1x256xf32> to vector<1x256xf32>
    %c0_2 = arith.constant 0 : index
    %c0_3 = arith.constant 0 : index
    %c0_4 = arith.constant 0 : index
    %2 = vector.load %arg2[%c0_2, %c0_3, %c0_4] : memref<2x1x256xf32, #tpu.memory_space<vmem>>, vector<2x1x256xf32>
    %c0_5 = arith.constant 0 : index
    %c0_6 = arith.constant 0 : index
    %c0_7 = arith.constant 0 : index
    %3 = vector.load %arg3[%c0_5, %c0_6, %c0_7] : memref<2x256x768xbf16, #tpu.memory_space<vmem>>, vector<2x256x768xbf16>
    %c0_8 = arith.constant 0 : index
    %c0_9 = arith.constant 0 : index
    %c0_10 = arith.constant 0 : index
    %4 = vector.load %arg4[%c0_8, %c0_9, %c0_10] : memref<2x256x768xbf16, #tpu.memory_space<vmem>>, vector<2x256x768xbf16>
    %c0_11 = arith.constant 0 : index
    %c0_12 = arith.constant 0 : index
    %c0_13 = arith.constant 0 : index
    %5 = vector.load %arg5[%c0_11, %c0_12, %c0_13] : memref<2x1x768xf32, #tpu.memory_space<vmem>>, vector<2x1x768xf32>
    %c0_14 = arith.constant 0 : index
    %c0_15 = arith.constant 0 : index
    %c0_16 = arith.constant 0 : index
    %6 = vector.load %arg6[%c0_14, %c0_15, %c0_16] : memref<2x1x256xf32, #tpu.memory_space<vmem>>, vector<2x1x256xf32>
    %7 = arith.truncf %1 : vector<1x256xf32> to vector<1x256xbf16>
    %8 = vector.extract_strided_slice %2 {offsets = [0, 0, 0], sizes = [1, 1, 256], strides = [1, 1, 1]} : vector<2x1x256xf32> to vector<1x1x256xf32>
    %9 = vector.shape_cast %8 : vector<1x1x256xf32> to vector<1x256xf32>
    %10 = vector.extract_strided_slice %3 {offsets = [0, 0, 0], sizes = [1, 256, 768], strides = [1, 1, 1]} : vector<2x256x768xbf16> to vector<1x256x768xbf16>
    %11 = vector.shape_cast %10 : vector<1x256x768xbf16> to vector<256x768xbf16>
    %cst = arith.constant dense<0.000000e+00> : vector<1x768xf32>
    %12 = tpu.matmul %7, %11, %cst {dimension_numbers = #tpu.dot_dimension_numbers<[1], [0], [0], [1], [0, 0, 1, 1], [], []>} : vector<1x256xbf16>, vector<256x768xbf16>, vector<1x768xf32> -> vector<1x768xf32>
    %13 = vector.extract_strided_slice %5 {offsets = [0, 0, 0], sizes = [1, 1, 768], strides = [1, 1, 1]} : vector<2x1x768xf32> to vector<1x1x768xf32>
    %14 = vector.shape_cast %13 : vector<1x1x768xf32> to vector<1x768xf32>
    %15 = arith.addf %12, %14 : vector<1x768xf32>
    %16 = arith.truncf %9 : vector<1x256xf32> to vector<1x256xbf16>
    %17 = vector.extract_strided_slice %4 {offsets = [0, 0, 0], sizes = [1, 256, 768], strides = [1, 1, 1]} : vector<2x256x768xbf16> to vector<1x256x768xbf16>
    %18 = vector.shape_cast %17 : vector<1x256x768xbf16> to vector<256x768xbf16>
    %cst_17 = arith.constant dense<0.000000e+00> : vector<1x768xf32>
    %19 = tpu.matmul %16, %18, %cst_17 {dimension_numbers = #tpu.dot_dimension_numbers<[1], [0], [0], [1], [0, 0, 1, 1], [], []>} : vector<1x256xbf16>, vector<256x768xbf16>, vector<1x768xf32> -> vector<1x768xf32>
    %20 = vector.extract_strided_slice %15 {offsets = [0, 0], sizes = [1, 256], strides = [1, 1]} : vector<1x768xf32> to vector<1x256xf32>
    %21 = vector.extract_strided_slice %19 {offsets = [0, 0], sizes = [1, 256], strides = [1, 1]} : vector<1x768xf32> to vector<1x256xf32>
    %22 = arith.addf %20, %21 : vector<1x256xf32>
    %23 = arith.negf %22 : vector<1x256xf32>
    %24 = math.exp %23 : vector<1x256xf32>
    %cst_18 = arith.constant 1.000000e+00 : f32
    %25 = vector.broadcast %cst_18 : f32 to vector<1x256xf32>
    %26 = arith.addf %25, %24 : vector<1x256xf32>
    %27 = arith.divf %25, %26 : vector<1x256xf32>
    %28 = vector.extract_strided_slice %15 {offsets = [0, 256], sizes = [1, 256], strides = [1, 1]} : vector<1x768xf32> to vector<1x256xf32>
    %29 = vector.extract_strided_slice %19 {offsets = [0, 256], sizes = [1, 256], strides = [1, 1]} : vector<1x768xf32> to vector<1x256xf32>
    %30 = arith.addf %28, %29 : vector<1x256xf32>
    %31 = arith.negf %30 : vector<1x256xf32>
    %32 = math.exp %31 : vector<1x256xf32>
    %cst_19 = arith.constant 1.000000e+00 : f32
    %33 = vector.broadcast %cst_19 : f32 to vector<1x256xf32>
    %34 = arith.addf %33, %32 : vector<1x256xf32>
    %35 = arith.divf %33, %34 : vector<1x256xf32>
    %36 = vector.extract_strided_slice %15 {offsets = [0, 512], sizes = [1, 256], strides = [1, 1]} : vector<1x768xf32> to vector<1x256xf32>
    %37 = vector.extract_strided_slice %19 {offsets = [0, 512], sizes = [1, 256], strides = [1, 1]} : vector<1x768xf32> to vector<1x256xf32>
    %38 = vector.extract_strided_slice %6 {offsets = [0, 0, 0], sizes = [1, 1, 256], strides = [1, 1, 1]} : vector<2x1x256xf32> to vector<1x1x256xf32>
    %39 = vector.shape_cast %38 : vector<1x1x256xf32> to vector<1x256xf32>
    %40 = arith.addf %37, %39 : vector<1x256xf32>
    %41 = arith.mulf %27, %40 : vector<1x256xf32>
    %42 = arith.addf %36, %41 : vector<1x256xf32>
    %43 = math.tanh %42 : vector<1x256xf32>
    %cst_20 = arith.constant 1.000000e+00 : f32
    %44 = vector.broadcast %cst_20 : f32 to vector<1x256xf32>
    %45 = arith.subf %44, %35 : vector<1x256xf32>
    %46 = arith.mulf %45, %43 : vector<1x256xf32>
    %47 = arith.mulf %35, %9 : vector<1x256xf32>
    %48 = arith.addf %46, %47 : vector<1x256xf32>
    %49 = vector.extract_strided_slice %2 {offsets = [1, 0, 0], sizes = [1, 1, 256], strides = [1, 1, 1]} : vector<2x1x256xf32> to vector<1x1x256xf32>
    %50 = vector.shape_cast %49 : vector<1x1x256xf32> to vector<1x256xf32>
    %51 = vector.extract_strided_slice %3 {offsets = [1, 0, 0], sizes = [1, 256, 768], strides = [1, 1, 1]} : vector<2x256x768xbf16> to vector<1x256x768xbf16>
    %52 = vector.shape_cast %51 : vector<1x256x768xbf16> to vector<256x768xbf16>
    %cst_21 = arith.constant dense<0.000000e+00> : vector<1x768xf32>
    %53 = tpu.matmul %7, %52, %cst_21 {dimension_numbers = #tpu.dot_dimension_numbers<[1], [0], [0], [1], [0, 0, 1, 1], [], []>} : vector<1x256xbf16>, vector<256x768xbf16>, vector<1x768xf32> -> vector<1x768xf32>
    %54 = vector.extract_strided_slice %5 {offsets = [1, 0, 0], sizes = [1, 1, 768], strides = [1, 1, 1]} : vector<2x1x768xf32> to vector<1x1x768xf32>
    %55 = vector.shape_cast %54 : vector<1x1x768xf32> to vector<1x768xf32>
    %56 = arith.addf %53, %55 : vector<1x768xf32>
    %57 = arith.truncf %50 : vector<1x256xf32> to vector<1x256xbf16>
    %58 = vector.extract_strided_slice %4 {offsets = [1, 0, 0], sizes = [1, 256, 768], strides = [1, 1, 1]} : vector<2x256x768xbf16> to vector<1x256x768xbf16>
    %59 = vector.shape_cast %58 : vector<1x256x768xbf16> to vector<256x768xbf16>
    %cst_22 = arith.constant dense<0.000000e+00> : vector<1x768xf32>
    %60 = tpu.matmul %57, %59, %cst_22 {dimension_numbers = #tpu.dot_dimension_numbers<[1], [0], [0], [1], [0, 0, 1, 1], [], []>} : vector<1x256xbf16>, vector<256x768xbf16>, vector<1x768xf32> -> vector<1x768xf32>
    %61 = vector.extract_strided_slice %56 {offsets = [0, 0], sizes = [1, 256], strides = [1, 1]} : vector<1x768xf32> to vector<1x256xf32>
    %62 = vector.extract_strided_slice %60 {offsets = [0, 0], sizes = [1, 256], strides = [1, 1]} : vector<1x768xf32> to vector<1x256xf32>
    %63 = arith.addf %61, %62 : vector<1x256xf32>
    %64 = arith.negf %63 : vector<1x256xf32>
    %65 = math.exp %64 : vector<1x256xf32>
    %cst_23 = arith.constant 1.000000e+00 : f32
    %66 = vector.broadcast %cst_23 : f32 to vector<1x256xf32>
    %67 = arith.addf %66, %65 : vector<1x256xf32>
    %68 = arith.divf %66, %67 : vector<1x256xf32>
    %69 = vector.extract_strided_slice %56 {offsets = [0, 256], sizes = [1, 256], strides = [1, 1]} : vector<1x768xf32> to vector<1x256xf32>
    %70 = vector.extract_strided_slice %60 {offsets = [0, 256], sizes = [1, 256], strides = [1, 1]} : vector<1x768xf32> to vector<1x256xf32>
    %71 = arith.addf %69, %70 : vector<1x256xf32>
    %72 = arith.negf %71 : vector<1x256xf32>
    %73 = math.exp %72 : vector<1x256xf32>
    %cst_24 = arith.constant 1.000000e+00 : f32
    %74 = vector.broadcast %cst_24 : f32 to vector<1x256xf32>
    %75 = arith.addf %74, %73 : vector<1x256xf32>
    %76 = arith.divf %74, %75 : vector<1x256xf32>
    %77 = vector.extract_strided_slice %56 {offsets = [0, 512], sizes = [1, 256], strides = [1, 1]} : vector<1x768xf32> to vector<1x256xf32>
    %78 = vector.extract_strided_slice %60 {offsets = [0, 512], sizes = [1, 256], strides = [1, 1]} : vector<1x768xf32> to vector<1x256xf32>
    %79 = vector.extract_strided_slice %6 {offsets = [1, 0, 0], sizes = [1, 1, 256], strides = [1, 1, 1]} : vector<2x1x256xf32> to vector<1x1x256xf32>
    %80 = vector.shape_cast %79 : vector<1x1x256xf32> to vector<1x256xf32>
    %81 = arith.addf %78, %80 : vector<1x256xf32>
    %82 = arith.mulf %68, %81 : vector<1x256xf32>
    %83 = arith.addf %77, %82 : vector<1x256xf32>
    %84 = math.tanh %83 : vector<1x256xf32>
    %cst_25 = arith.constant 1.000000e+00 : f32
    %85 = vector.broadcast %cst_25 : f32 to vector<1x256xf32>
    %86 = arith.subf %85, %76 : vector<1x256xf32>
    %87 = arith.mulf %86, %84 : vector<1x256xf32>
    %88 = arith.mulf %76, %50 : vector<1x256xf32>
    %89 = arith.addf %87, %88 : vector<1x256xf32>
    %90 = vector.shape_cast %48 : vector<1x256xf32> to vector<1x1x256xf32>
    %91 = vector.shape_cast %89 : vector<1x256xf32> to vector<1x1x256xf32>
    %92 = tpu.concatenate %90, %91 in 0 : vector<1x1x256xf32>, vector<1x1x256xf32> -> vector<2x1x256xf32>
    %93 = tpu.concatenate %48, %89 in 1 : vector<1x256xf32>, vector<1x256xf32> -> vector<1x512xf32>
    %c0_26 = arith.constant 0 : index
    %c0_27 = arith.constant 0 : index
    %c0_28 = arith.constant 0 : index
    %94 = vector.load %arg8[%c0_26, %c0_27, %c0_28] : memref<2x1x256xf32, #tpu.memory_space<vmem>>, vector<2x1x256xf32>
    tpu.vector_store %arg8[%c0_26, %c0_27, %c0_28], %92 {strides = array<i32>} : memref<2x1x256xf32, #tpu.memory_space<vmem>>, vector<2x1x256xf32>,
    %95 = vector.shape_cast %93 : vector<1x512xf32> to vector<1x1x512xf32>
    %c0_29 = arith.constant 0 : index
    %c0_30 = arith.constant 0 : index
    %c0_31 = arith.constant 0 : index
    %96 = vector.load %arg7[%c0_29, %c0_30, %c0_31] : memref<1x1x512xf32, #tpu.memory_space<vmem>>, vector<1x1x512xf32>
    tpu.vector_store %arg7[%c0_29, %c0_30, %c0_31], %95 {strides = array<i32>} : memref<1x1x512xf32, #tpu.memory_space<vmem>>, vector<1x1x512xf32>,
    return
  }
  func.func @transform_0(%arg0: i32) -> (i32, i32, i32) {
    %c0_i32 = arith.constant 0 : i32
    %c0_i32_0 = arith.constant 0 : i32
    %c0_i32_1 = arith.constant 0 : i32
    %c0_i32_2 = arith.constant 0 : i32
    return %c0_i32, %c0_i32_0, %c0_i32_1 : i32, i32, i32
  }
  func.func @transform_1(%arg0: i32) -> (i32, i32, i32) {
    %c0_i32 = arith.constant 0 : i32
    %c0_i32_0 = arith.constant 0 : i32
    %c0_i32_1 = arith.constant 0 : i32
    %c0_i32_2 = arith.constant 0 : i32
    return %c0_i32, %c0_i32_0, %c0_i32_1 : i32, i32, i32
  }
  func.func @transform_2(%arg0: i32) -> (i32, i32, i32) {
    %c0_i32 = arith.constant 0 : i32
    %c0_i32_0 = arith.constant 0 : i32
    %c0_i32_1 = arith.constant 0 : i32
    %c0_i32_2 = arith.constant 0 : i32
    return %c0_i32, %c0_i32_0, %c0_i32_1 : i32, i32, i32
  }
  func.func @transform_3(%arg0: i32) -> (i32, i32, i32) {
    %c0_i32 = arith.constant 0 : i32
    %c0_i32_0 = arith.constant 0 : i32
    %c0_i32_1 = arith.constant 0 : i32
    %c0_i32_2 = arith.constant 0 : i32
    return %c0_i32, %c0_i32_0, %c0_i32_1 : i32, i32, i32
  }
  func.func @transform_4(%arg0: i32) -> (i32, i32, i32) {
    %c0_i32 = arith.constant 0 : i32
    %c0_i32_0 = arith.constant 0 : i32
    %c0_i32_1 = arith.constant 0 : i32
    %c0_i32_2 = arith.constant 0 : i32
    return %c0_i32, %c0_i32_0, %c0_i32_1 : i32, i32, i32
  }
  func.func @transform_5(%arg0: i32) -> (i32, i32, i32) {
    %c0_i32 = arith.constant 0 : i32
    %c0_i32_0 = arith.constant 0 : i32
    %c0_i32_1 = arith.constant 0 : i32
    %c0_i32_2 = arith.constant 0 : i32
    return %c0_i32, %c0_i32_0, %c0_i32_1 : i32, i32, i32
  }
  func.func @transform_6(%arg0: i32) -> (i32, i32, i32) {
    %c0_i32 = arith.constant 0 : i32
    %c0_i32_0 = arith.constant 0 : i32
    %c0_i32_1 = arith.constant 0 : i32
    %c0_i32_2 = arith.constant 0 : i32
    return %c0_i32, %c0_i32_0, %c0_i32_1 : i32, i32, i32
  }
  func.func @transform_7(%arg0: i32) -> (i32, i32, i32) {
    %c0_i32 = arith.constant 0 : i32
    %c0_i32_0 = arith.constant 0 : i32
    %c0_i32_1 = arith.constant 0 : i32
    %c0_i32_2 = arith.constant 0 : i32
    return %c0_i32, %c0_i32_0, %c0_i32_1 : i32, i32, i32
  }
}

</mosaic_0001>

<bundles_post_ra>
// kernel: tpu_custom_call.1
= control target key start
LH: loop header
LB: loop body
LE: loop exit
PB: predicated region body
PF: predicated region fallthrough
CT: control target
= control target key end

     0   :  { %13 = vsyncpa [#allocation3], 0  ;;  %s4614_s0 = inlined_call_operand.hbm [shape: f32[1,1,256], index: 0, kind: input, shape index: {}]   ;;  %s4615_s1 = inlined_call_operand.hbm [shape: f32[2,1,256], index: 1, kind: input, shape index: {}]   ;;  %s4616_s2 = inlined_call_operand.hbm [shape: bf16[2,256,768], index: 2, kind: input, shape index: {}]   ;;  %s4617_s3 = inlined_call_operand.hbm [shape: bf16[2,256,768], index: 3, kind: input, shape index: {}]   ;;  %s4618_s4 = inlined_call_operand.hbm [shape: f32[2,1,768], index: 4, kind: input, shape index: {}]   ;;  %s4619_s5 = inlined_call_operand.vmem [shape: f32[2,1,256], index: 5, kind: input, shape index: {}]   ;;  %s4620_s6 = inlined_call_operand.hbm [shape: f32[1,1,512], index: 6, kind: output, shape index: {0}]   ;;  %s4621_s7 = inlined_call_operand.hbm [shape: f32[2,1,256], index: 7, kind: output, shape index: {1}]  }
   0x1   :  { %14 = vsyncpa [#allocation6], 0 }
   0x2   :  { %15 = vsyncpa [#allocation9], 0 }
   0x3   :  { %16 = vsyncpa [#allocation4], 0 }
   0x4   :  { %17 = vsyncpa [#allocation13], 0  ;;  %s4366_s24 = smov [#allocation5]  }
   0x5   :  { %s33_s25 = sshll.u32 %s4366_s24, 4  ;;  %s34_s25 = int_to_ptr.vmem [resolvable:$true] %s33_s25 }
   0x6   :  { %s4224_s26 = scalar_lea.vmem %s34_s25, 64  ;;  %p4229_p1 = scmp.lt.s32.totalorder %s34_s25, %s34_s25 }
   0x7   :  { %p4225_p0 = scmp.ne.s32.totalorder %s34_s25, %s4224_s26  ;;  %p4230_p2 = scmp.lt.s32.totalorder %s4224_s26, %s4224_s26 }
   0x9   :  { %p4231_p3 = por %p4230_p2, %p4229_p1 }
   0xb   :  { %p4232_p4 = pnand %p4231_p3, %p4225_p0 }
   0xd   :  { %4235 = shalt.err (!%p4232_p4)
}
   0xe   :  { %s4367_s27 = smov 32   ;;  %s4368_s28 = smov 2  }
   0xf   :  { %39 = dma.hbm_to_vmem [thread:$0]  %s4615_s1, 64, %s34_s25, [#allocation6], %s4367_s27, %s4367_s27, %s4368_s28  }
  0x10   :  { %s4369_s8 = smov [#allocation8]   ;;  %s4370_s10 = smov [#allocation2]  }
  0x11   :  { %s57_s9 = sshll.u32 %s4369_s8, 4  ;;  %s24_s11 = sshll.u32 %s4370_s10, 4  ;;  %s58_s9 = int_to_ptr.vmem [resolvable:$true] %s57_s9  ;;  %s25_s11 = int_to_ptr.vmem [resolvable:$true] %s24_s11 }
  0x12   :  { %s4244_s12 = scalar_lea.vmem %s58_s9, 24576  ;;  %p4249_p6 = scmp.lt.s32.totalorder %s58_s9, %s58_s9 }
  0x13   :  { %p4245_p5 = scmp.ne.s32.totalorder %s58_s9, %s4244_s12  ;;  %p4250_p7 = scmp.lt.s32.totalorder %s4244_s12, %s4244_s12 }
  0x15   :  { %p4251_p8 = por %p4250_p7, %p4249_p6 }
  0x17   :  { %p4252_p9 = pnand %p4251_p8, %p4245_p5 }
  0x19   :  { %4255 = shalt.err (!%p4252_p9)
}
  0x1a   :  { %s4371_s13 = smov 384   ;;  %s4372_s14 = smov 24  }
  0x1b   :  { %63 = dma.hbm_to_vmem [thread:$0]  %s4617_s3, 24576, %s58_s9, [#allocation9], %s4371_s13, %s4371_s13, %s4372_s14  }
  0x1c   :  { %s4264_s1 = scalar_lea.vmem %s25_s11, 32  ;;  %p4269_p11 = scmp.lt.s32.totalorder %s25_s11, %s25_s11 }
  0x1d   :  { %p4265_p10 = scmp.ne.s32.totalorder %s25_s11, %s4264_s1  ;;  %p4270_p12 = scmp.lt.s32.totalorder %s4264_s1, %s4264_s1 }
  0x1f   :  { %p4271_p13 = por %p4270_p12, %p4269_p11 }
  0x21   :  { %p4272_p0 = pnand %p4271_p13, %p4265_p10 }
  0x23   :  { %4275 = shalt.err (!%p4272_p0)
}
  0x24   :  { %27 = dma.hbm_to_vmem [thread:$0]  %s4614_s0, 32, %s25_s11, [#allocation3]  }
  0x25   :  { %s4373_s19 = smov [#allocation7]   ;;  %s4374_s21 = smov [#allocation10]  }
  0x26   :  { %s45_s20 = sshll.u32 %s4373_s19, 4  ;;  %s69_s22 = sshll.u32 %s4374_s21, 4  ;;  %s46_s20 = int_to_ptr.vmem [resolvable:$true] %s45_s20  ;;  %s70_s22 = int_to_ptr.vmem [resolvable:$true] %s69_s22 }
  0x27   :  { %s4284_s23 = scalar_lea.vmem %s46_s20, 24576  ;;  %p4289_p2 = scmp.lt.s32.totalorder %s46_s20, %s46_s20 }
  0x28   :  { %p4285_p1 = scmp.ne.s32.totalorder %s46_s20, %s4284_s23  ;;  %p4290_p3 = scmp.lt.s32.totalorder %s4284_s23, %s4284_s23 }
  0x2a   :  { %p4291_p4 = por %p4290_p3, %p4289_p2 }
  0x2c   :  { %p4292_p5 = pnand %p4291_p4, %p4285_p1 }
  0x2e   :  { %4295 = shalt.err (!%p4292_p5)
}
  0x2f   :  { %51 = dma.hbm_to_vmem [thread:$0]  %s4616_s2, 24576, %s46_s20, [#allocation6], %s4371_s13, %s4371_s13, %s4372_s14  }
  0x30   :  { %s4304_s25 = scalar_lea.vmem %s70_s22, 192  ;;  %p4309_p7 = scmp.lt.s32.totalorder %s70_s22, %s70_s22 }
  0x31   :  { %p4305_p6 = scmp.ne.s32.totalorder %s70_s22, %s4304_s25  ;;  %p4310_p8 = scmp.lt.s32.totalorder %s4304_s25, %s4304_s25 }
  0x33   :  { %p4311_p9 = por %p4310_p8, %p4309_p7 }
  0x35   :  { %p4312_p10 = pnand %p4311_p9, %p4305_p6 }
  0x37   :  { %4315 = shalt.err (!%p4312_p10)
}
  0x38   :  { %s4375_s0 = smov 96   ;;  %s4376_s26 = smov 6  }
  0x39   :  { %75 = dma.hbm_to_vmem [thread:$0]  %s4618_s4, 192, %s70_s22, [#allocation9], %s4375_s0, %s4375_s0, %s4376_s26  }
  0x3a   :  { %4356 = dma.done.wait [#allocation3], 32  }
  0x3b   :  { %4357 = vsyncadd [#allocation3], 4294967264 }
  0x3c   :  { %4358 = dma.done.wait [#allocation6], 24640  }
  0x3d   :  { %4359 = vsyncadd [#allocation6], 4294942656 }
  0x3e   :  { %4360 = dma.done.wait [#allocation9], 24768  }
  0x3f   :  { %4361 = vsyncadd [#allocation9], 4294942528  ;;  %v3600_v0 = vld [vmem:[#allocation7 + $0x154] ss:$24 sps:$4 sm:$0xff]   ;;  %v3604_v2 = vld [vmem:[#allocation7 + $0x150] ss:$24 sps:$4 sm:$0xff]   ;;  %v485_v36 = vlaneseq }
  0x40   :  { %v3602_v1 = vld [vmem:[#allocation7 + $0x15c] ss:$24 sps:$4 sm:$0xff]   ;;  %1008 = vmatprep.subr.bf16.mxu0 %v3600_v0  ;;  %v3605_v3 = vld [vmem:[#allocation7 + $0x158] ss:$24 sps:$4 sm:$0xff]   ;;  %v3608_v5 = vld [vmem:[#allocation7 + $0x12c] ss:$24 sps:$4 sm:$0xff]  }
  0x41   :  { %1049 = vmatprep.subr.bf16.mxu1 %v3602_v1  ;;  %v3606_v4 = vld [vmem:[#allocation7 + $0x124] ss:$24 sps:$4 sm:$0xff]   ;;  %1009 = vmatpush1.bf16.msra.mxu0 %v3604_v2  ;;  %v3610_v6 = vld [vmem:[#allocation7 + $0x120] ss:$24 sps:$4 sm:$0xff]   ;;  %v3612_v8 = vld [vmem:[#allocation7 + $0xf4] ss:$24 sps:$4 sm:$0xff]  }
  0x42   :  { %1050 = vmatpush1.bf16.msra.mxu1 %v3605_v3  ;;  %1010 = vmatprep.subr.bf16.mxu0 %v3606_v4  ;;  %v3611_v7 = vld [vmem:[#allocation7 + $0x128] ss:$24 sps:$4 sm:$0xff]   ;;  %v3614_v9 = vld [vmem:[#allocation7 + $0xfc] ss:$24 sps:$4 sm:$0xff]   ;;  %v3617_v11 = vld [vmem:[#allocation7 + $0xf8] ss:$24 sps:$4 sm:$0xff]  }
  0x43   :  { %1051 = vmatprep.subr.bf16.mxu1 %v3608_v5  ;;  %v3616_v10 = vld [vmem:[#allocation7 + $0xf0] ss:$24 sps:$4 sm:$0xff]   ;;  %v3618_v12 = vld [vmem:[#allocation7 + $0xc4] ss:$24 sps:$4 sm:$0xff]   ;;  %v3622_v14 = vld [vmem:[#allocation7 + $0xc0] ss:$24 sps:$4 sm:$0xff]  }
  0x44   :  { %v3620_v13 = vld [vmem:[#allocation7 + $0xcc] ss:$24 sps:$4 sm:$0xff]   ;;  %v3623_v15 = vld [vmem:[#allocation7 + $0xc8] ss:$24 sps:$4 sm:$0xff]   ;;  %v3626_v17 = vld [vmem:[#allocation7 + $0x9c] ss:$24 sps:$4 sm:$0xff]  }
  0x45   :  { %1011 = vmatpush1.bf16.msra.mxu0 %v3610_v6  ;;  %v3624_v16 = vld [vmem:[#allocation7 + $0x94] ss:$24 sps:$4 sm:$0xff]   ;;  %v3628_v18 = vld [vmem:[#allocation7 + $0x90] ss:$24 sps:$4 sm:$0xff]   ;;  %v3630_v20 = vld [vmem:[#allocation7 + $0x64] ss:$24 sps:$4 sm:$0xff]  }
  0x46   :  { %1052 = vmatpush1.bf16.msra.mxu1 %v3611_v7  ;;  %1012 = vmatprep.subr.bf16.mxu0 %v3612_v8  ;;  %v3629_v19 = vld [vmem:[#allocation7 + $0x98] ss:$24 sps:$4 sm:$0xff]   ;;  %v3632_v21 = vld [vmem:[#allocation7 + $0x6c] ss:$24 sps:$4 sm:$0xff]   ;;  %v3635_v23 = vld [vmem:[#allocation7 + $0x68] ss:$24 sps:$4 sm:$0xff]  }
  0x47   :  { %1053 = vmatprep.subr.bf16.mxu1 %v3614_v9  ;;  %v3634_v22 = vld [vmem:[#allocation7 + $0x60] ss:$24 sps:$4 sm:$0xff]   ;;  %v3636_v24 = vld [vmem:[#allocation7 + $0x34] ss:$24 sps:$4 sm:$0xff]   ;;  %v3640_v26 = vld [vmem:[#allocation7 + $0x30] ss:$24 sps:$4 sm:$0xff]  }
  0x48   :  { %v3638_v25 = vld [vmem:[#allocation7 + $0x3c] ss:$24 sps:$4 sm:$0xff]   ;;  %v3641_v27 = vld [vmem:[#allocation7 + $0x38] ss:$24 sps:$4 sm:$0xff]   ;;  %v3644_v29 = vld [vmem:[#allocation7 + $0xc] ss:$24 sps:$4 sm:$0xff]  }
  0x49   :  { %1013 = vmatpush1.bf16.msra.mxu0 %v3616_v10  ;;  %v3642_v28 = vld [vmem:[#allocation7 + $0x4] ss:$24 sps:$4 sm:$0xff]   ;;  %v3646_v30 = vld [vmem:[#allocation7] ss:$24 sps:$4 sm:$0xff]   ;;  %v3648_v32 = vld [vmem:[#allocation7 + $0x2d4] ss:$24 sps:$4 sm:$0xff]  }
  0x4a   :  { %1054 = vmatpush1.bf16.msra.mxu1 %v3617_v11  ;;  %1014 = vmatprep.subr.bf16.mxu0 %v3618_v12  ;;  %v3647_v31 = vld [vmem:[#allocation7 + $0x8] ss:$24 sps:$4 sm:$0xff]   ;;  %v3650_v33 = vld [vmem:[#allocation7 + $0x2dc] ss:$24 sps:$4 sm:$0xff]   ;;  %v3653_v35 = vld [vmem:[#allocation7 + $0x2d8] ss:$24 sps:$4 sm:$0xff]  }
  0x4b   :  { %1055 = vmatprep.subr.bf16.mxu1 %v3620_v13  ;;  %v3652_v34 = vld [vmem:[#allocation7 + $0x2d0] ss:$24 sps:$4 sm:$0xff]   ;;  %v3654_v37 = vld [vmem:[#allocation7 + $0x2a4] ss:$24 sps:$4 sm:$0xff]   ;;  %v3658_v39 = vld [vmem:[#allocation7 + $0x2a0] ss:$24 sps:$4 sm:$0xff]  }
  0x4c   :  { %v3656_v38 = vld [vmem:[#allocation7 + $0x2ac] ss:$24 sps:$4 sm:$0xff]   ;;  %v4439_v40 = vshrl.u32 %v485_v36, 7  ;;  %v3659_v41 = vld [vmem:[#allocation7 + $0x2a8] ss:$24 sps:$4 sm:$0xff]   ;;  %vm4573_vm0 = vcmp.lt.s32.totalorder %v485_v36, 256 }
  0x4d   :  { %1015 = vmatpush1.bf16.msra.mxu0 %v3622_v14  ;;  %v3660_v42 = vld [vmem:[#allocation7 + $0x274] ss:$24 sps:$4 sm:$0xff]   ;;  %v3664_v44 = vld [vmem:[#allocation7 + $0x270] ss:$24 sps:$4 sm:$0xff]   ;;  %v3666_v47 = vld [vmem:[#allocation7 + $0x244] ss:$24 sps:$4 sm:$0xff]  }
  0x4e   :  { %1056 = vmatpush1.bf16.msra.mxu1 %v3623_v15  ;;  %1016 = vmatprep.subr.bf16.mxu0 %v3624_v16  ;;  %v3662_v43 = vld [vmem:[#allocation7 + $0x27c] ss:$24 sps:$4 sm:$0xff]   ;;  %v3665_v45 = vld [vmem:[#allocation7 + $0x278] ss:$24 sps:$4 sm:$0xff]   ;;  %v4442_v46 = vsub.s32 1, %v4439_v40  ;;  %v4450_v1 = vsub.s32 0, %v4439_v40 }
  0x4f   :  { %1057 = vmatprep.subr.bf16.mxu1 %v3626_v17  ;;  %v3668_v48 = vld [vmem:[#allocation7 + $0x24c] ss:$24 sps:$4 sm:$0xff]   ;;  %v93_v49 = vld [vmem:[#allocation2] sm:$0x3]  ;;  %v3671_v52 = vld [vmem:[#allocation7 + $0x248] ss:$24 sps:$4 sm:$0xff]  }
  0x50   :  { %v3670_v50 = vld [vmem:[#allocation7 + $0x240] ss:$24 sps:$4 sm:$0xff]   ;;  %v492_v51 = vrot.slane %v93_v49, %v4442_v46  ;;  %v3672_v53 = vld [vmem:[#allocation7 + $0x214] ss:$24 sps:$4 sm:$0xff]   ;;  %v3676_v56 = vld [vmem:[#allocation7 + $0x210] ss:$24 sps:$4 sm:$0xff]   ;;  %v488_v6 = vrot.slane %v93_v49, %v4450_v1 }
  0x51   :  { %1017 = vmatpush1.bf16.msra.mxu0 %v3628_v18  ;;  %v3674_v54 = vld [vmem:[#allocation7 + $0x21c] ss:$24 sps:$4 sm:$0xff]   ;;  %v3677_v57 = vld [vmem:[#allocation7 + $0x218] ss:$24 sps:$4 sm:$0xff]   ;;  %v3680_v59 = vld [vmem:[#allocation7 + $0x1ec] ss:$24 sps:$4 sm:$0xff]  }
  0x52   :  { %1058 = vmatpush1.bf16.msra.mxu1 %v3629_v19  ;;  %1018 = vmatprep.subr.bf16.mxu0 %v3630_v20  ;;  %v4445_v55 = vpack.c.bf16 %v492_v51, %v492_v51  ;;  %v3678_v58 = vld [vmem:[#allocation7 + $0x1e4] ss:$24 sps:$4 sm:$0xff]   ;;  %v3682_v60 = vld [vmem:[#allocation7 + $0x1e0] ss:$24 sps:$4 sm:$0xff]   ;;  %v3684_v62 = vld [vmem:[#allocation7 + $0x1b4] ss:$24 sps:$4 sm:$0xff]   ;;  %v4453_v10 = vpack.c.bf16 %v488_v6, %v488_v6 }
  0x53   :  { %1059 = vmatprep.subr.bf16.mxu1 %v3632_v21  ;;  %v3683_v61 = vld [vmem:[#allocation7 + $0x1e8] ss:$24 sps:$4 sm:$0xff]   ;;  %v3686_v63 = vld [vmem:[#allocation7 + $0x1bc] ss:$24 sps:$4 sm:$0xff]   ;;  %v3689_v2 = vld [vmem:[#allocation7 + $0x1b8] ss:$24 sps:$4 sm:$0xff]  }
  0x54   :  { %1040 = vmatprep.mubr.bf16.mxu0 %v4445_v55  ;;  %1081 = vmatprep.mubr.bf16.mxu1 %v4445_v55  ;;  %v3688_v0 = vld [vmem:[#allocation7 + $0x1b0] ss:$24 sps:$4 sm:$0xff]   ;;  %v3690_v3 = vld [vmem:[#allocation7 + $0x184] ss:$24 sps:$4 sm:$0xff]   ;;  %v3694_v5 = vld [vmem:[#allocation7 + $0x180] ss:$24 sps:$4 sm:$0xff]  }
  0x55   :  { %1019 = vmatpush1.bf16.msra.mxu0 %v3634_v22  ;;  %v3692_v4 = vld [vmem:[#allocation7 + $0x18c] ss:$24 sps:$4 sm:$0xff]   ;;  %v3695_v7 = vld [vmem:[#allocation7 + $0x188] ss:$24 sps:$4 sm:$0xff]   ;;  %s4379_s11 = smov [#allocation11]   ;;  %vm3158_vm1 = vcmp.lt.s32.totalorder %v485_v36, 512 }
  0x56   :  { %1060 = vmatpush1.bf16.msra.mxu1 %v3635_v23  ;;  %1020 = vmatprep.subr.bf16.mxu0 %v3636_v24  ;;  %v3698_v8 = vld [vmem:[#allocation7 + $0x164] ss:$24 sps:$4 sm:$0xff]   ;;  %v3701_v9 = vld [vmem:[#allocation8 + $0x154] ss:$24 sps:$4 sm:$0xff]   ;;  %v3696_v11 = vld [vmem:[#allocation7 + $0x160] ss:$24 sps:$4 sm:$0xff]  }
  0x57   :  { %1061 = vmatprep.subr.bf16.mxu1 %v3638_v25  ;;  %v3699_v12 = vld [vmem:[#allocation8 + $0x150] ss:$24 sps:$4 sm:$0xff]   ;;  %v3704_v13 = vld [vmem:[#allocation7 + $0x134] ss:$24 sps:$4 sm:$0xff]   ;;  %v3707_v14 = vld [vmem:[#allocation8 + $0x124] ss:$24 sps:$4 sm:$0xff]  }
  0x58   :  { %v3702_v15 = vld [vmem:[#allocation7 + $0x130] ss:$24 sps:$4 sm:$0xff]   ;;  %v3705_v16 = vld [vmem:[#allocation8 + $0x120] ss:$24 sps:$4 sm:$0xff]   ;;  %v3710_v17 = vld [vmem:[#allocation7 + $0x104] ss:$24 sps:$4 sm:$0xff]  }
  0x59   :  { %1021 = vmatpush1.bf16.msra.mxu0 %v3640_v26  ;;  %v3713_v18 = vld [vmem:[#allocation8 + $0xf4] ss:$24 sps:$4 sm:$0xff]   ;;  %v3708_v19 = vld [vmem:[#allocation7 + $0x100] ss:$24 sps:$4 sm:$0xff]   ;;  %v3711_v20 = vld [vmem:[#allocation8 + $0xf0] ss:$24 sps:$4 sm:$0xff]  }
  0x5a   :  { %1062 = vmatpush1.bf16.msra.mxu1 %v3641_v27  ;;  %1022 = vmatprep.subr.bf16.mxu0 %v3642_v28  ;;  %v3716_v21 = vld [vmem:[#allocation7 + $0xd4] ss:$24 sps:$4 sm:$0xff]   ;;  %v3719_v22 = vld [vmem:[#allocation8 + $0xc4] ss:$24 sps:$4 sm:$0xff]   ;;  %v3714_v23 = vld [vmem:[#allocation7 + $0xd0] ss:$24 sps:$4 sm:$0xff]  }
  0x5b   :  { %1063 = vmatprep.subr.bf16.mxu1 %v3644_v29  ;;  %v3717_v24 = vld [vmem:[#allocation8 + $0xc0] ss:$24 sps:$4 sm:$0xff]   ;;  %v3722_v25 = vld [vmem:[#allocation7 + $0xa4] ss:$24 sps:$4 sm:$0xff]   ;;  %v3725_v26 = vld [vmem:[#allocation8 + $0x94] ss:$24 sps:$4 sm:$0xff]  }
  0x5c   :  { %v3720_v27 = vld [vmem:[#allocation7 + $0xa0] ss:$24 sps:$4 sm:$0xff]   ;;  %v3723_v28 = vld [vmem:[#allocation8 + $0x90] ss:$24 sps:$4 sm:$0xff]   ;;  %v3728_v29 = vld [vmem:[#allocation7 + $0x74] ss:$24 sps:$4 sm:$0xff]  }
  0x5d   :  { %1023 = vmatpush1.bf16.msra.mxu0 %v3646_v30  ;;  %v3731_v30 = vld [vmem:[#allocation8 + $0x64] ss:$24 sps:$4 sm:$0xff]   ;;  %v3744_v49 = vld [vmem:[#allocation7 + $0x2e0] ss:$24 sps:$4 sm:$0xff]   ;;  %v3752_v51 = vld [vmem:[#allocation7 + $0x2b4] ss:$24 sps:$4 sm:$0xff]  }
  0x5e   :  { %1064 = vmatpush1.bf16.msra.mxu1 %v3647_v31  ;;  %1024 = vmatprep.subr.bf16.mxu0 %v3648_v32  ;;  %v3726_v31 = vld [vmem:[#allocation7 + $0x70] ss:$24 sps:$4 sm:$0xff]   ;;  %v3729_v32 = vld [vmem:[#allocation8 + $0x60] ss:$24 sps:$4 sm:$0xff]   ;;  %v3779_v6 = vld [vmem:[#allocation8 + $0x1e4] ss:$24 sps:$4 sm:$0xff]  }
  0x5f   :  { %1065 = vmatprep.subr.bf16.mxu1 %v3650_v33  ;;  %v3734_v33 = vld [vmem:[#allocation7 + $0x44] ss:$24 sps:$4 sm:$0xff]   ;;  %s3167_s12 = sshll.u32 %s4379_s11, 4  ;;  %s3168_s12 = int_to_ptr.vmem [resolvable:$true] %s3167_s12 }
  0x61   :  { %1025 = vmatpush2.bf16.msra.mxu0 %v3652_v34  ;;  %v3737_v34 = vld [vmem:[#allocation8 + $0x34] ss:$24 sps:$4 sm:$0xff]  }
  0x62   :  { %1066 = vmatpush2.bf16.msra.mxu1 %v3653_v35  ;;  %1026 = vmatprep.subr.bf16.mxu0 %v3654_v37  ;;  %v4458_v35 = vld [vmem:[#allocation5] sm:$0x3] }
  0x63   :  { %1067 = vmatprep.subr.bf16.mxu1 %v3656_v38  ;;  %v4462_v37 = vrot.slane %v4458_v35, %v4442_v46  ;;  %v3732_v38 = vld [vmem:[#allocation7 + $0x40] ss:$24 sps:$4 sm:$0xff]  }
  0x65   :  { %1027 = vmatpush2.bf16.msra.mxu0 %v3658_v39  ;;  %v3735_v39 = vld [vmem:[#allocation8 + $0x30] ss:$24 sps:$4 sm:$0xff]  }
  0x66   :  { %1068 = vmatpush2.bf16.msra.mxu1 %v3659_v41  ;;  %1028 = vmatprep.subr.bf16.mxu0 %v3660_v42  ;;  %v4466_v41 = vpack.c.bf16 %v4462_v37, %v4462_v37  ;;  %v3740_v42 = vld [vmem:[#allocation7 + $0x14] ss:$24 sps:$4 sm:$0xff]  }
  0x67   :  { %1069 = vmatprep.subr.bf16.mxu1 %v3662_v43  ;;  %v3743_v43 = vld [vmem:[#allocation8 + $0x4] ss:$24 sps:$4 sm:$0xff]  }
  0x69   :  { %1029 = vmatpush2.bf16.msra.mxu0 %v3664_v44  ;;  %v3738_v44 = vld [vmem:[#allocation7 + $0x10] ss:$24 sps:$4 sm:$0xff]  }
  0x6a   :  { %1070 = vmatpush2.bf16.msra.mxu1 %v3665_v45  ;;  %1030 = vmatprep.subr.bf16.mxu0 %v3666_v47  ;;  %v3741_v45 = vld [vmem:[#allocation8] ss:$24 sps:$4 sm:$0xff]   ;;  %v3746_v47 = vld [vmem:[#allocation7 + $0x2e4] ss:$24 sps:$4 sm:$0xff]  }
  0x6b   :  { %1071 = vmatprep.subr.bf16.mxu1 %v3668_v48  ;;  %v3749_v48 = vld [vmem:[#allocation8 + $0x2d4] ss:$24 sps:$4 sm:$0xff]  }
  0x6d   :  { %1031 = vmatpush2.bf16.msra.mxu0 %v3670_v50  ;;  %v3747_v50 = vld [vmem:[#allocation8 + $0x2d0] ss:$24 sps:$4 sm:$0xff]  }
  0x6e   :  { %1072 = vmatpush2.bf16.msra.mxu1 %v3671_v52  ;;  %1032 = vmatprep.subr.bf16.mxu0 %v3672_v53  ;;  %v3755_v52 = vld [vmem:[#allocation8 + $0x2a4] ss:$24 sps:$4 sm:$0xff]   ;;  %v3750_v53 = vld [vmem:[#allocation7 + $0x2b0] ss:$24 sps:$4 sm:$0xff]  }
  0x6f   :  { %1073 = vmatprep.subr.bf16.mxu1 %v3674_v54  ;;  %v3753_v54 = vld [vmem:[#allocation8 + $0x2a0] ss:$24 sps:$4 sm:$0xff]  }
  0x71   :  { %1033 = vmatpush2.bf16.msra.mxu0 %v3676_v56  ;;  %v3758_v56 = vld [vmem:[#allocation7 + $0x284] ss:$24 sps:$4 sm:$0xff]  }
  0x72   :  { %1074 = vmatpush2.bf16.msra.mxu1 %v3677_v57  ;;  %1034 = vmatprep.subr.bf16.mxu0 %v3678_v58  ;;  %v3761_v57 = vld [vmem:[#allocation8 + $0x274] ss:$24 sps:$4 sm:$0xff]   ;;  %v3756_v58 = vld [vmem:[#allocation7 + $0x280] ss:$24 sps:$4 sm:$0xff]  }
  0x73   :  { %1075 = vmatprep.subr.bf16.mxu1 %v3680_v59  ;;  %v3759_v59 = vld [vmem:[#allocation8 + $0x270] ss:$24 sps:$4 sm:$0xff]  }
  0x75   :  { %1035 = vmatpush2.bf16.msra.mxu0 %v3682_v60  ;;  %v3764_v60 = vld [vmem:[#allocation7 + $0x254] ss:$24 sps:$4 sm:$0xff]  }
  0x76   :  { %1076 = vmatpush2.bf16.msra.mxu1 %v3683_v61  ;;  %1036 = vmatprep.subr.bf16.mxu0 %v3684_v62  ;;  %v3767_v61 = vld [vmem:[#allocation8 + $0x244] ss:$24 sps:$4 sm:$0xff]   ;;  %v3762_v62 = vld [vmem:[#allocation7 + $0x250] ss:$24 sps:$4 sm:$0xff]  }
  0x77   :  { %1077 = vmatprep.subr.bf16.mxu1 %v3686_v63  ;;  %v3765_v63 = vld [vmem:[#allocation8 + $0x240] ss:$24 sps:$4 sm:$0xff]  }
  0x79   :  { %1037 = vmatpush2.bf16.msra.mxu0 %v3688_v0  ;;  %v3770_v0 = vld [vmem:[#allocation7 + $0x224] ss:$24 sps:$4 sm:$0xff]  }
  0x7a   :  { %1078 = vmatpush2.bf16.msra.mxu1 %v3689_v2  ;;  %1038 = vmatprep.subr.bf16.mxu0 %v3690_v3  ;;  %v3773_v2 = vld [vmem:[#allocation8 + $0x214] ss:$24 sps:$4 sm:$0xff]   ;;  %v3768_v3 = vld [vmem:[#allocation7 + $0x220] ss:$24 sps:$4 sm:$0xff]  }
  0x7b   :  { %1079 = vmatprep.subr.bf16.mxu1 %v3692_v4  ;;  %v3771_v4 = vld [vmem:[#allocation8 + $0x210] ss:$24 sps:$4 sm:$0xff]  }
  0x7d   :  { %1039 = vmatpush2.bf16.msra.mxu0 %v3694_v5  ;;  %v3776_v5 = vld [vmem:[#allocation7 + $0x1f4] ss:$24 sps:$4 sm:$0xff]  }
  0x7e   :  { %1080 = vmatpush2.bf16.msra.mxu1 %v3695_v7  ;;  %1090 = vmatprep.subr.bf16.mxu0 %v3698_v8  ;;  %v3774_v7 = vld [vmem:[#allocation7 + $0x1f0] ss:$24 sps:$4 sm:$0xff]   ;;  %v3777_v8 = vld [vmem:[#allocation8 + $0x1e0] ss:$24 sps:$4 sm:$0xff]  }
  0x7f   :  { %1624 = vmatprep.subr.bf16.mxu1 %v3701_v9  ;;  %v3782_v9 = vld [vmem:[#allocation7 + $0x1c4] ss:$24 sps:$4 sm:$0xff]  }
  0x80   :  { %1041 = vmatmul.mubr.bf16.vlgmr.msra.gmra.mxu0 %v4453_v10 }
  0x81   :  { %1082 = vmatmul.mubr.bf16.vlgmr.msra.gmra.mxu1 %v4453_v10  ;;  %1091 = vmatpush1.bf16.msra.mxu0 %v3696_v11  ;;  %v3785_v11 = vld [vmem:[#allocation8 + $0x1b4] ss:$24 sps:$4 sm:$0xff]  }
  0x82   :  { %1625 = vmatpush1.bf16.msra.mxu1 %v3699_v12  ;;  %1092 = vmatprep.subr.bf16.mxu0 %v3704_v13  ;;  %v3780_v12 = vld [vmem:[#allocation7 + $0x1c0] ss:$24 sps:$4 sm:$0xff]   ;;  %v3783_v13 = vld [vmem:[#allocation8 + $0x1b0] ss:$24 sps:$4 sm:$0xff]  }
  0x83   :  { %1626 = vmatprep.subr.bf16.mxu1 %v3707_v14  ;;  %1122 = vmatprep.mubr.bf16.mxu0 %v4445_v55  ;;  %v3788_v14 = vld [vmem:[#allocation7 + $0x194] ss:$24 sps:$4 sm:$0xff]  }
  0x84   :  { %1656 = vmatprep.mubr.bf16.mxu1 %v4466_v41 }
  0x85   :  { %1093 = vmatpush1.bf16.msra.mxu0 %v3702_v15  ;;  %v3791_v15 = vld [vmem:[#allocation8 + $0x184] ss:$24 sps:$4 sm:$0xff]  }
  0x86   :  { %1627 = vmatpush1.bf16.msra.mxu1 %v3705_v16  ;;  %1094 = vmatprep.subr.bf16.mxu0 %v3710_v17  ;;  %v4471_v16 = vrot.slane %v4458_v35, %v4450_v1  ;;  %v3786_v17 = vld [vmem:[#allocation7 + $0x190] ss:$24 sps:$4 sm:$0xff]  }
  0x87   :  { %1628 = vmatprep.subr.bf16.mxu1 %v3713_v18  ;;  %v3789_v18 = vld [vmem:[#allocation8 + $0x180] ss:$24 sps:$4 sm:$0xff]   ;;  %v3813_v35 = vld [vmem:[#allocation8 + $0xd0] ss:$24 sps:$4 sm:$0xff]  }
  0x89   :  { %1095 = vmatpush1.bf16.msra.mxu0 %v3708_v19  ;;  %v3794_v19 = vld [vmem:[#allocation8 + $0x15c] ss:$24 sps:$4 sm:$0xff]  }
  0x8a   :  { %1629 = vmatpush1.bf16.msra.mxu1 %v3711_v20  ;;  %1096 = vmatprep.subr.bf16.mxu0 %v3716_v21  ;;  %v3797_v20 = vld [vmem:[#allocation8 + $0x164] ss:$24 sps:$4 sm:$0xff]   ;;  %v4475_v21 = vpack.c.bf16 %v4471_v16, %v4471_v16 }
  0x8b   :  { %1630 = vmatprep.subr.bf16.mxu1 %v3719_v22  ;;  %v3792_v22 = vld [vmem:[#allocation8 + $0x158] ss:$24 sps:$4 sm:$0xff]  }
  0x8d   :  { %1097 = vmatpush1.bf16.msra.mxu0 %v3714_v23  ;;  %v3795_v23 = vld [vmem:[#allocation8 + $0x160] ss:$24 sps:$4 sm:$0xff]  }
  0x8e   :  { %1631 = vmatpush1.bf16.msra.mxu1 %v3717_v24  ;;  %1098 = vmatprep.subr.bf16.mxu0 %v3722_v25  ;;  %v3800_v24 = vld [vmem:[#allocation8 + $0x12c] ss:$24 sps:$4 sm:$0xff]  }
  0x8f   :  { %1632 = vmatprep.subr.bf16.mxu1 %v3725_v26  ;;  %v3803_v25 = vld [vmem:[#allocation8 + $0x134] ss:$24 sps:$4 sm:$0xff]   ;;  %v3798_v26 = vld [vmem:[#allocation8 + $0x128] ss:$24 sps:$4 sm:$0xff]  }
  0x91   :  { %1099 = vmatpush1.bf16.msra.mxu0 %v3720_v27  ;;  %v3801_v27 = vld [vmem:[#allocation8 + $0x130] ss:$24 sps:$4 sm:$0xff]  }
  0x92   :  { %1633 = vmatpush1.bf16.msra.mxu1 %v3723_v28  ;;  %1100 = vmatprep.subr.bf16.mxu0 %v3728_v29  ;;  %v3806_v28 = vld [vmem:[#allocation8 + $0xfc] ss:$24 sps:$4 sm:$0xff]  }
  0x93   :  { %1634 = vmatprep.subr.bf16.mxu1 %v3731_v30  ;;  %v3809_v29 = vld [vmem:[#allocation8 + $0x104] ss:$24 sps:$4 sm:$0xff]   ;;  %v3804_v30 = vld [vmem:[#allocation8 + $0xf8] ss:$24 sps:$4 sm:$0xff]  }
  0x95   :  { %1101 = vmatpush1.bf16.msra.mxu0 %v3726_v31  ;;  %v3807_v31 = vld [vmem:[#allocation8 + $0x100] ss:$24 sps:$4 sm:$0xff]  }
  0x96   :  { %1635 = vmatpush1.bf16.msra.mxu1 %v3729_v32  ;;  %1102 = vmatprep.subr.bf16.mxu0 %v3734_v33  ;;  %v3812_v32 = vld [vmem:[#allocation8 + $0xcc] ss:$24 sps:$4 sm:$0xff]  }
  0x97   :  { %1636 = vmatprep.subr.bf16.mxu1 %v3737_v34  ;;  %v3815_v33 = vld [vmem:[#allocation8 + $0xd4] ss:$24 sps:$4 sm:$0xff]   ;;  %v3810_v34 = vld [vmem:[#allocation8 + $0xc8] ss:$24 sps:$4 sm:$0xff]  }
  0x99   :  { %1103 = vmatpush1.bf16.msra.mxu0 %v3732_v38  ;;  %v3818_v38 = vld [vmem:[#allocation8 + $0x9c] ss:$24 sps:$4 sm:$0xff]  }
  0x9a   :  { %1637 = vmatpush1.bf16.msra.mxu1 %v3735_v39  ;;  %1104 = vmatprep.subr.bf16.mxu0 %v3740_v42  ;;  %v3821_v39 = vld [vmem:[#allocation8 + $0xa4] ss:$24 sps:$4 sm:$0xff]   ;;  %v3816_v42 = vld [vmem:[#allocation8 + $0x98] ss:$24 sps:$4 sm:$0xff]  }
  0x9b   :  { %1638 = vmatprep.subr.bf16.mxu1 %v3743_v43  ;;  %v3824_v43 = vld [vmem:[#allocation8 + $0x6c] ss:$24 sps:$4 sm:$0xff]  }
  0x9d   :  { %1105 = vmatpush1.bf16.msra.mxu0 %v3738_v44  ;;  %v3827_v44 = vld [vmem:[#allocation8 + $0x74] ss:$24 sps:$4 sm:$0xff]  }
  0x9e   :  { %1639 = vmatpush1.bf16.msra.mxu1 %v3741_v45  ;;  %1106 = vmatprep.subr.bf16.mxu0 %v3746_v47  ;;  %v3822_v45 = vld [vmem:[#allocation8 + $0x68] ss:$24 sps:$4 sm:$0xff]  }
  0x9f   :  { %1640 = vmatprep.subr.bf16.mxu1 %v3749_v48  ;;  %v3825_v47 = vld [vmem:[#allocation8 + $0x70] ss:$24 sps:$4 sm:$0xff]   ;;  %v3830_v48 = vld [vmem:[#allocation8 + $0x3c] ss:$24 sps:$4 sm:$0xff]  }
  0xa1   :  { %1107 = vmatpush2.bf16.msra.mxu0 %v3744_v49  ;;  %v3833_v49 = vld [vmem:[#allocation8 + $0x44] ss:$24 sps:$4 sm:$0xff]  }
  0xa2   :  { %1641 = vmatpush2.bf16.msra.mxu1 %v3747_v50  ;;  %1108 = vmatprep.subr.bf16.mxu0 %v3752_v51  ;;  %v3828_v50 = vld [vmem:[#allocation8 + $0x38] ss:$24 sps:$4 sm:$0xff]  }
  0xa3   :  { %1642 = vmatprep.subr.bf16.mxu1 %v3755_v52  ;;  %v3831_v51 = vld [vmem:[#allocation8 + $0x40] ss:$24 sps:$4 sm:$0xff]   ;;  %v3836_v52 = vld [vmem:[#allocation8 + $0xc] ss:$24 sps:$4 sm:$0xff]  }
  0xa5   :  { %1109 = vmatpush2.bf16.msra.mxu0 %v3750_v53  ;;  %v3839_v53 = vld [vmem:[#allocation8 + $0x14] ss:$24 sps:$4 sm:$0xff]  }
  0xa6   :  { %1643 = vmatpush2.bf16.msra.mxu1 %v3753_v54  ;;  %1110 = vmatprep.subr.bf16.mxu0 %v3758_v56  ;;  %v3834_v54 = vld [vmem:[#allocation8 + $0x8] ss:$24 sps:$4 sm:$0xff]  }
  0xa7   :  { %1644 = vmatprep.subr.bf16.mxu1 %v3761_v57  ;;  %v3837_v56 = vld [vmem:[#allocation8 + $0x10] ss:$24 sps:$4 sm:$0xff]   ;;  %v3842_v57 = vld [vmem:[#allocation8 + $0x2dc] ss:$24 sps:$4 sm:$0xff]  }
  0xa9   :  { %1111 = vmatpush2.bf16.msra.mxu0 %v3756_v58  ;;  %v3845_v58 = vld [vmem:[#allocation8 + $0x2e4] ss:$24 sps:$4 sm:$0xff]  }
  0xaa   :  { %1645 = vmatpush2.bf16.msra.mxu1 %v3759_v59  ;;  %1112 = vmatprep.subr.bf16.mxu0 %v3764_v60  ;;  %v3840_v59 = vld [vmem:[#allocation8 + $0x2d8] ss:$24 sps:$4 sm:$0xff]  }
  0xab   :  { %1646 = vmatprep.subr.bf16.mxu1 %v3767_v61  ;;  %v3843_v60 = vld [vmem:[#allocation8 + $0x2e0] ss:$24 sps:$4 sm:$0xff]   ;;  %v3848_v61 = vld [vmem:[#allocation8 + $0x2ac] ss:$24 sps:$4 sm:$0xff]  }
  0xad   :  { %1113 = vmatpush2.bf16.msra.mxu0 %v3762_v62  ;;  %v3851_v62 = vld [vmem:[#allocation8 + $0x2b4] ss:$24 sps:$4 sm:$0xff]  }
  0xae   :  { %1647 = vmatpush2.bf16.msra.mxu1 %v3765_v63  ;;  %1114 = vmatprep.subr.bf16.mxu0 %v3770_v0  ;;  %v3846_v63 = vld [vmem:[#allocation8 + $0x2a8] ss:$24 sps:$4 sm:$0xff]  }
  0xaf   :  { %1648 = vmatprep.subr.bf16.mxu1 %v3773_v2  ;;  %v3849_v0 = vld [vmem:[#allocation8 + $0x2b0] ss:$24 sps:$4 sm:$0xff]   ;;  %v3854_v2 = vld [vmem:[#allocation8 + $0x27c] ss:$24 sps:$4 sm:$0xff]  }
  0xb1   :  { %1115 = vmatpush2.bf16.msra.mxu0 %v3768_v3  ;;  %v3857_v3 = vld [vmem:[#allocation8 + $0x284] ss:$24 sps:$4 sm:$0xff]  }
  0xb2   :  { %1649 = vmatpush2.bf16.msra.mxu1 %v3771_v4  ;;  %1116 = vmatprep.subr.bf16.mxu0 %v3776_v5  ;;  %v3852_v4 = vld [vmem:[#allocation8 + $0x278] ss:$24 sps:$4 sm:$0xff]  }
  0xb3   :  { %1650 = vmatprep.subr.bf16.mxu1 %v3779_v6  ;;  %v3855_v5 = vld [vmem:[#allocation8 + $0x280] ss:$24 sps:$4 sm:$0xff]   ;;  %v3860_v6 = vld [vmem:[#allocation8 + $0x24c] ss:$24 sps:$4 sm:$0xff]  }
  0xb5   :  { %1117 = vmatpush2.bf16.msra.mxu0 %v3774_v7  ;;  %v3863_v7 = vld [vmem:[#allocation8 + $0x254] ss:$24 sps:$4 sm:$0xff]  }
  0xb6   :  { %1651 = vmatpush2.bf16.msra.mxu1 %v3777_v8  ;;  %1118 = vmatprep.subr.bf16.mxu0 %v3782_v9  ;;  %v3858_v8 = vld [vmem:[#allocation8 + $0x248] ss:$24 sps:$4 sm:$0xff]  }
  0xb7   :  { %1652 = vmatprep.subr.bf16.mxu1 %v3785_v11  ;;  %v3861_v9 = vld [vmem:[#allocation8 + $0x250] ss:$24 sps:$4 sm:$0xff]   ;;  %v3866_v11 = vld [vmem:[#allocation8 + $0x21c] ss:$24 sps:$4 sm:$0xff]  }
  0xb9   :  { %1119 = vmatpush2.bf16.msra.mxu0 %v3780_v12  ;;  %v3869_v12 = vld [vmem:[#allocation8 + $0x224] ss:$24 sps:$4 sm:$0xff]  }
  0xba   :  { %1653 = vmatpush2.bf16.msra.mxu1 %v3783_v13  ;;  %1120 = vmatprep.subr.bf16.mxu0 %v3788_v14  ;;  %v3864_v13 = vld [vmem:[#allocation8 + $0x218] ss:$24 sps:$4 sm:$0xff]  }
  0xbb   :  { %1654 = vmatprep.subr.bf16.mxu1 %v3791_v15  ;;  %v3867_v14 = vld [vmem:[#allocation8 + $0x220] ss:$24 sps:$4 sm:$0xff]   ;;  %v3872_v15 = vld [vmem:[#allocation8 + $0x1ec] ss:$24 sps:$4 sm:$0xff]  }
  0xbd   :  { %1121 = vmatpush2.bf16.msra.mxu0 %v3786_v17  ;;  %v3875_v17 = vld [vmem:[#allocation8 + $0x1f4] ss:$24 sps:$4 sm:$0xff]  }
  0xbe   :  { %1655 = vmatpush2.bf16.msra.mxu1 %v3789_v18  ;;  %1665 = vmatprep.subr.bf16.mxu0 %v3794_v19  ;;  %v3870_v18 = vld [vmem:[#allocation8 + $0x1e8] ss:$24 sps:$4 sm:$0xff]  }
  0xbf   :  { %1706 = vmatprep.subr.bf16.mxu1 %v3797_v20  ;;  %v3873_v19 = vld [vmem:[#allocation8 + $0x1f0] ss:$24 sps:$4 sm:$0xff]   ;;  %v3878_v20 = vld [vmem:[#allocation8 + $0x1bc] ss:$24 sps:$4 sm:$0xff]  }
  0xc0   :  { %1123 = vmatmul.mubr.bf16.vlgmr.msra.gmra.mxu0 %v4453_v10 }
  0xc1   :  { %1657 = vmatmul.mubr.bf16.vlgmr.msra.gmra.mxu1 %v4475_v21  ;;  %1666 = vmatpush1.bf16.msra.mxu0 %v3792_v22  ;;  %v3881_v22 = vld [vmem:[#allocation8 + $0x1c4] ss:$24 sps:$4 sm:$0xff]  }
  0xc2   :  { %1707 = vmatpush1.bf16.msra.mxu1 %v3795_v23  ;;  %1667 = vmatprep.subr.bf16.mxu0 %v3800_v24  ;;  %v3876_v23 = vld [vmem:[#allocation8 + $0x1b8] ss:$24 sps:$4 sm:$0xff]  }
  0xc3   :  { %1708 = vmatprep.subr.bf16.mxu1 %v3803_v25  ;;  %1697 = vmatprep.mubr.bf16.mxu0 %v4466_v41  ;;  %v3879_v24 = vld [vmem:[#allocation8 + $0x1c0] ss:$24 sps:$4 sm:$0xff]   ;;  %v3884_v25 = vld [vmem:[#allocation8 + $0x18c] ss:$24 sps:$4 sm:$0xff]  }
  0xc4   :  { %1738 = vmatprep.mubr.bf16.mxu1 %v4466_v41  ;;  %v3819_v41 = vld [vmem:[#allocation8 + $0xa0] ss:$24 sps:$4 sm:$0xff]  }
  0xc5   :  { %1668 = vmatpush1.bf16.msra.mxu0 %v3798_v26  ;;  %v3887_v26 = vld [vmem:[#allocation8 + $0x194] ss:$24 sps:$4 sm:$0xff]  }
  0xc6   :  { %1709 = vmatpush1.bf16.msra.mxu1 %v3801_v27  ;;  %1669 = vmatprep.subr.bf16.mxu0 %v3806_v28  ;;  %v3882_v27 = vld [vmem:[#allocation8 + $0x188] ss:$24 sps:$4 sm:$0xff]  }
  0xc7   :  { %1710 = vmatprep.subr.bf16.mxu1 %v3809_v29  ;;  %v3885_v28 = vld [vmem:[#allocation8 + $0x190] ss:$24 sps:$4 sm:$0xff]   ;;  %v3890_v29 = vld [vmem:[#allocation7 + $0x454] ss:$24 sps:$4 sm:$0xff]  }
  0xc9   :  { %1670 = vmatpush1.bf16.msra.mxu0 %v3804_v30  ;;  %v3893_v30 = vld [vmem:[#allocation7 + $0x45c] ss:$24 sps:$4 sm:$0xff]  }
  0xca   :  { %1711 = vmatpush1.bf16.msra.mxu1 %v3807_v31  ;;  %1671 = vmatprep.subr.bf16.mxu0 %v3812_v32  ;;  %v3888_v31 = vld [vmem:[#allocation7 + $0x450] ss:$24 sps:$4 sm:$0xff]  }
  0xcb   :  { %1712 = vmatprep.subr.bf16.mxu1 %v3815_v33  ;;  %v3891_v32 = vld [vmem:[#allocation7 + $0x458] ss:$24 sps:$4 sm:$0xff]   ;;  %v3896_v33 = vld [vmem:[#allocation7 + $0x424] ss:$24 sps:$4 sm:$0xff]  }
  0xcd   :  { %1672 = vmatpush1.bf16.msra.mxu0 %v3810_v34  ;;  %v3899_v34 = vld [vmem:[#allocation7 + $0x42c] ss:$24 sps:$4 sm:$0xff]  }
  0xce   :  { %1713 = vmatpush1.bf16.msra.mxu1 %v3813_v35  ;;  %1673 = vmatprep.subr.bf16.mxu0 %v3818_v38  ;;  %v3894_v35 = vld [vmem:[#allocation7 + $0x420] ss:$24 sps:$4 sm:$0xff]  }
  0xcf   :  { %1714 = vmatprep.subr.bf16.mxu1 %v3821_v39  ;;  %v3897_v38 = vld [vmem:[#allocation7 + $0x428] ss:$24 sps:$4 sm:$0xff]   ;;  %v3902_v39 = vld [vmem:[#allocation7 + $0x3f4] ss:$24 sps:$4 sm:$0xff]  }
  0xd1   :  { %1674 = vmatpush1.bf16.msra.mxu0 %v3816_v42  ;;  %v3905_v42 = vld [vmem:[#allocation7 + $0x3fc] ss:$24 sps:$4 sm:$0xff]  }
  0xd2   :  { %1715 = vmatpush1.bf16.msra.mxu1 %v3819_v41  ;;  %1675 = vmatprep.subr.bf16.mxu0 %v3824_v43  ;;  %v3900_v41 = vld [vmem:[#allocation7 + $0x3f0] ss:$24 sps:$4 sm:$0xff]  }
  0xd3   :  { %1716 = vmatprep.subr.bf16.mxu1 %v3827_v44  ;;  %v3903_v43 = vld [vmem:[#allocation7 + $0x3f8] ss:$24 sps:$4 sm:$0xff]   ;;  %v3908_v44 = vld [vmem:[#allocation7 + $0x3c4] ss:$24 sps:$4 sm:$0xff]  }
  0xd5   :  { %1676 = vmatpush1.bf16.msra.mxu0 %v3822_v45  ;;  %v3906_v45 = vld [vmem:[#allocation7 + $0x3c0] ss:$24 sps:$4 sm:$0xff]  }
  0xd6   :  { %1717 = vmatpush1.bf16.msra.mxu1 %v3825_v47  ;;  %1677 = vmatprep.subr.bf16.mxu0 %v3830_v48  ;;  %v3909_v47 = vld [vmem:[#allocation7 + $0x3c8] ss:$24 sps:$4 sm:$0xff]   ;;  %v3914_v48 = vld [vmem:[#allocation7 + $0x394] ss:$24 sps:$4 sm:$0xff]  }
  0xd7   :  { %1718 = vmatprep.subr.bf16.mxu1 %v3833_v49  ;;  %v3917_v49 = vld [vmem:[#allocation7 + $0x39c] ss:$24 sps:$4 sm:$0xff]  }
  0xd9   :  { %1678 = vmatpush1.bf16.msra.mxu0 %v3828_v50  ;;  %v3912_v50 = vld [vmem:[#allocation7 + $0x390] ss:$24 sps:$4 sm:$0xff]  }
  0xda   :  { %1719 = vmatpush1.bf16.msra.mxu1 %v3831_v51  ;;  %1679 = vmatprep.subr.bf16.mxu0 %v3836_v52  ;;  %v3915_v51 = vld [vmem:[#allocation7 + $0x398] ss:$24 sps:$4 sm:$0xff]   ;;  %v3920_v52 = vld [vmem:[#allocation7 + $0x364] ss:$24 sps:$4 sm:$0xff]  }
  0xdb   :  { %1720 = vmatprep.subr.bf16.mxu1 %v3839_v53  ;;  %v3923_v53 = vld [vmem:[#allocation7 + $0x36c] ss:$24 sps:$4 sm:$0xff]  }
  0xdd   :  { %1680 = vmatpush1.bf16.msra.mxu0 %v3834_v54  ;;  %v3918_v54 = vld [vmem:[#allocation7 + $0x360] ss:$24 sps:$4 sm:$0xff]  }
  0xde   :  { %1721 = vmatpush1.bf16.msra.mxu1 %v3837_v56  ;;  %1681 = vmatprep.subr.bf16.mxu0 %v3842_v57  ;;  %v3921_v56 = vld [vmem:[#allocation7 + $0x368] ss:$24 sps:$4 sm:$0xff]   ;;  %v3926_v57 = vld [vmem:[#allocation7 + $0x334] ss:$24 sps:$4 sm:$0xff]  }
  0xdf   :  { %1722 = vmatprep.subr.bf16.mxu1 %v3845_v58  ;;  %v3929_v58 = vld [vmem:[#allocation7 + $0x33c] ss:$24 sps:$4 sm:$0xff]  }
  0xe1   :  { %1682 = vmatpush2.bf16.msra.mxu0 %v3840_v59  ;;  %v3924_v59 = vld [vmem:[#allocation7 + $0x330] ss:$24 sps:$4 sm:$0xff]  }
  0xe2   :  { %1723 = vmatpush2.bf16.msra.mxu1 %v3843_v60  ;;  %1683 = vmatprep.subr.bf16.mxu0 %v3848_v61  ;;  %v3927_v60 = vld [vmem:[#allocation7 + $0x338] ss:$24 sps:$4 sm:$0xff]   ;;  %v3932_v61 = vld [vmem:[#allocation7 + $0x304] ss:$24 sps:$4 sm:$0xff]  }
  0xe3   :  { %1724 = vmatprep.subr.bf16.mxu1 %v3851_v62  ;;  %v3935_v62 = vld [vmem:[#allocation7 + $0x30c] ss:$24 sps:$4 sm:$0xff]  }
  0xe5   :  { %1684 = vmatpush2.bf16.msra.mxu0 %v3846_v63  ;;  %v3930_v63 = vld [vmem:[#allocation7 + $0x300] ss:$24 sps:$4 sm:$0xff]  }
  0xe6   :  { %1725 = vmatpush2.bf16.msra.mxu1 %v3849_v0  ;;  %1685 = vmatprep.subr.bf16.mxu0 %v3854_v2  ;;  %v3933_v0 = vld [vmem:[#allocation7 + $0x308] ss:$24 sps:$4 sm:$0xff]   ;;  %v3938_v2 = vld [vmem:[#allocation7 + $0x5d4] ss:$24 sps:$4 sm:$0xff]  }
  0xe7   :  { %1726 = vmatprep.subr.bf16.mxu1 %v3857_v3  ;;  %v3941_v3 = vld [vmem:[#allocation7 + $0x5dc] ss:$24 sps:$4 sm:$0xff]  }
  0xe9   :  { %1686 = vmatpush2.bf16.msra.mxu0 %v3852_v4  ;;  %v3936_v4 = vld [vmem:[#allocation7 + $0x5d0] ss:$24 sps:$4 sm:$0xff]  }
  0xea   :  { %1727 = vmatpush2.bf16.msra.mxu1 %v3855_v5  ;;  %1687 = vmatprep.subr.bf16.mxu0 %v3860_v6  ;;  %v3939_v5 = vld [vmem:[#allocation7 + $0x5d8] ss:$24 sps:$4 sm:$0xff]   ;;  %v3944_v6 = vld [vmem:[#allocation7 + $0x5a4] ss:$24 sps:$4 sm:$0xff]  }
  0xeb   :  { %1728 = vmatprep.subr.bf16.mxu1 %v3863_v7  ;;  %v3947_v7 = vld [vmem:[#allocation7 + $0x5ac] ss:$24 sps:$4 sm:$0xff]  }
  0xed   :  { %1688 = vmatpush2.bf16.msra.mxu0 %v3858_v8  ;;  %v3942_v8 = vld [vmem:[#allocation7 + $0x5a0] ss:$24 sps:$4 sm:$0xff]  }
  0xee   :  { %1729 = vmatpush2.bf16.msra.mxu1 %v3861_v9  ;;  %1689 = vmatprep.subr.bf16.mxu0 %v3866_v11  ;;  %v3945_v9 = vld [vmem:[#allocation7 + $0x5a8] ss:$24 sps:$4 sm:$0xff]   ;;  %v3950_v11 = vld [vmem:[#allocation7 + $0x574] ss:$24 sps:$4 sm:$0xff]  }
  0xef   :  { %1730 = vmatprep.subr.bf16.mxu1 %v3869_v12  ;;  %v3953_v12 = vld [vmem:[#allocation7 + $0x57c] ss:$24 sps:$4 sm:$0xff]  }
  0xf1   :  { %1690 = vmatpush2.bf16.msra.mxu0 %v3864_v13  ;;  %v3948_v13 = vld [vmem:[#allocation7 + $0x570] ss:$24 sps:$4 sm:$0xff]  }
  0xf2   :  { %1731 = vmatpush2.bf16.msra.mxu1 %v3867_v14  ;;  %1691 = vmatprep.subr.bf16.mxu0 %v3872_v15  ;;  %v3951_v14 = vld [vmem:[#allocation7 + $0x578] ss:$24 sps:$4 sm:$0xff]   ;;  %v3956_v15 = vld [vmem:[#allocation7 + $0x544] ss:$24 sps:$4 sm:$0xff]  }
  0xf3   :  { %1732 = vmatprep.subr.bf16.mxu1 %v3875_v17  ;;  %v3959_v17 = vld [vmem:[#allocation7 + $0x54c] ss:$24 sps:$4 sm:$0xff]  }
  0xf5   :  { %1692 = vmatpush2.bf16.msra.mxu0 %v3870_v18  ;;  %v3954_v18 = vld [vmem:[#allocation7 + $0x540] ss:$24 sps:$4 sm:$0xff]  }
  0xf6   :  { %1733 = vmatpush2.bf16.msra.mxu1 %v3873_v19  ;;  %1693 = vmatprep.subr.bf16.mxu0 %v3878_v20  ;;  %v3957_v19 = vld [vmem:[#allocation7 + $0x548] ss:$24 sps:$4 sm:$0xff]   ;;  %v3962_v20 = vld [vmem:[#allocation7 + $0x514] ss:$24 sps:$4 sm:$0xff]  }
  0xf7   :  { %1734 = vmatprep.subr.bf16.mxu1 %v3881_v22  ;;  %v3965_v22 = vld [vmem:[#allocation7 + $0x51c] ss:$24 sps:$4 sm:$0xff]  }
  0xf9   :  { %1694 = vmatpush2.bf16.msra.mxu0 %v3876_v23  ;;  %v3960_v23 = vld [vmem:[#allocation7 + $0x510] ss:$24 sps:$4 sm:$0xff]  }
  0xfa   :  { %1735 = vmatpush2.bf16.msra.mxu1 %v3879_v24  ;;  %1695 = vmatprep.subr.bf16.mxu0 %v3884_v25  ;;  %v3963_v24 = vld [vmem:[#allocation7 + $0x518] ss:$24 sps:$4 sm:$0xff]   ;;  %v3968_v25 = vld [vmem:[#allocation7 + $0x4e4] ss:$24 sps:$4 sm:$0xff]  }
  0xfb   :  { %1736 = vmatprep.subr.bf16.mxu1 %v3887_v26  ;;  %v3971_v26 = vld [vmem:[#allocation7 + $0x4ec] ss:$24 sps:$4 sm:$0xff]  }
  0xfd   :  { %1696 = vmatpush2.bf16.msra.mxu0 %v3882_v27  ;;  %v3966_v27 = vld [vmem:[#allocation7 + $0x4e0] ss:$24 sps:$4 sm:$0xff]  }
  0xfe   :  { %1737 = vmatpush2.bf16.msra.mxu1 %v3885_v28  ;;  %2313 = vmatprep.subr.bf16.mxu0 %v3890_v29  ;;  %v3969_v28 = vld [vmem:[#allocation7 + $0x4e8] ss:$24 sps:$4 sm:$0xff]   ;;  %v3974_v29 = vld [vmem:[#allocation7 + $0x4b4] ss:$24 sps:$4 sm:$0xff]  }
  0xff   :  { %2354 = vmatprep.subr.bf16.mxu1 %v3893_v30  ;;  %v3977_v30 = vld [vmem:[#allocation7 + $0x4bc] ss:$24 sps:$4 sm:$0xff]  }
 0x100   :  { %1698 = vmatmul.mubr.bf16.vlgmr.msra.gmra.mxu0 %v4475_v21 }
 0x101   :  { %1739 = vmatmul.mubr.bf16.vlgmr.msra.gmra.mxu1 %v4475_v21  ;;  %2314 = vmatpush1.bf16.msra.mxu0 %v3888_v31  ;;  %v3911_v21 = vld [vmem:[#allocation7 + $0x3cc] ss:$24 sps:$4 sm:$0xff]   ;;  %v3972_v31 = vld [vmem:[#allocation7 + $0x4b0] ss:$24 sps:$4 sm:$0xff]  }
 0x102   :  { %2355 = vmatpush1.bf16.msra.mxu1 %v3891_v32  ;;  %2315 = vmatprep.subr.bf16.mxu0 %v3896_v33  ;;  %v3975_v32 = vld [vmem:[#allocation7 + $0x4b8] ss:$24 sps:$4 sm:$0xff]   ;;  %v3980_v33 = vld [vmem:[#allocation7 + $0x484] ss:$24 sps:$4 sm:$0xff]  }
 0x103   :  { %2356 = vmatprep.subr.bf16.mxu1 %v3899_v34  ;;  %2345 = vmatprep.mubr.bf16.mxu0 %v4445_v55  ;;  %v3983_v34 = vld [vmem:[#allocation7 + $0x48c] ss:$24 sps:$4 sm:$0xff]  }
 0x104   :  { %2386 = vmatprep.mubr.bf16.mxu1 %v4445_v55 }
 0x105   :  { %2316 = vmatpush1.bf16.msra.mxu0 %v3894_v35  ;;  %v3978_v35 = vld [vmem:[#allocation7 + $0x480] ss:$24 sps:$4 sm:$0xff]  }
 0x106   :  { %2357 = vmatpush1.bf16.msra.mxu1 %v3897_v38  ;;  %2317 = vmatprep.subr.bf16.mxu0 %v3902_v39  ;;  %v3981_v38 = vld [vmem:[#allocation7 + $0x488] ss:$24 sps:$4 sm:$0xff]   ;;  %v4485_v39 = vld [vmem:[#allocation5 + $0x2] sm:$0x3] }
 0x107   :  { %2358 = vmatprep.subr.bf16.mxu1 %v3905_v42  ;;  %v3986_v42 = vld [vmem:[#allocation7 + $0x464] ss:$24 sps:$4 sm:$0xff]  }
 0x109   :  { %2318 = vmatpush1.bf16.msra.mxu0 %v3900_v41  ;;  %v3989_v41 = vld [vmem:[#allocation8 + $0x454] ss:$24 sps:$4 sm:$0xff]  }
 0x10a   :  { %2359 = vmatpush1.bf16.msra.mxu1 %v3903_v43  ;;  %2319 = vmatprep.subr.bf16.mxu0 %v3908_v44  ;;  %v4489_v43 = vrot.slane %v4485_v39, %v4442_v46  ;;  %v3984_v44 = vld [vmem:[#allocation7 + $0x460] ss:$24 sps:$4 sm:$0xff]  }
 0x10b   :  { %2360 = vmatprep.subr.bf16.mxu1 %v3911_v21  ;;  %v3987_v21 = vld [vmem:[#allocation8 + $0x450] ss:$24 sps:$4 sm:$0xff]  }
 0x10d   :  { %2320 = vmatpush1.bf16.msra.mxu0 %v3906_v45  ;;  %v3992_v45 = vld [vmem:[#allocation7 + $0x434] ss:$24 sps:$4 sm:$0xff]  }
 0x10e   :  { %2361 = vmatpush1.bf16.msra.mxu1 %v3909_v47  ;;  %2321 = vmatprep.subr.bf16.mxu0 %v3914_v48  ;;  %v3995_v47 = vld [vmem:[#allocation8 + $0x424] ss:$24 sps:$4 sm:$0xff]   ;;  %v4493_v48 = vpack.c.bf16 %v4489_v43, %v4489_v43 }
 0x10f   :  { %2362 = vmatprep.subr.bf16.mxu1 %v3917_v49 }
 0x111   :  { %2322 = vmatpush1.bf16.msra.mxu0 %v3912_v50 }
 0x112   :  { %2363 = vmatpush1.bf16.msra.mxu1 %v3915_v51  ;;  %2323 = vmatprep.subr.bf16.mxu0 %v3920_v52  ;;  %v3990_v51 = vld [vmem:[#allocation7 + $0x430] ss:$24 sps:$4 sm:$0xff]   ;;  %v3993_v52 = vld [vmem:[#allocation8 + $0x420] ss:$24 sps:$4 sm:$0xff]  }
 0x113   :  { %2364 = vmatprep.subr.bf16.mxu1 %v3923_v53 }
 0x115   :  { %2324 = vmatpush1.bf16.msra.mxu0 %v3918_v54  ;;  %v3998_v54 = vld [vmem:[#allocation7 + $0x404] ss:$24 sps:$4 sm:$0xff]  }
 0x116   :  { %2365 = vmatpush1.bf16.msra.mxu1 %v3921_v56  ;;  %2325 = vmatprep.subr.bf16.mxu0 %v3926_v57  ;;  %v4001_v56 = vld [vmem:[#allocation8 + $0x3f4] ss:$24 sps:$4 sm:$0xff]  }
 0x117   :  { %2366 = vmatprep.subr.bf16.mxu1 %v3929_v58 }
 0x119   :  { %2326 = vmatpush1.bf16.msra.mxu0 %v3924_v59 }
 0x11a   :  { %2367 = vmatpush1.bf16.msra.mxu1 %v3927_v60  ;;  %2327 = vmatprep.subr.bf16.mxu0 %v3932_v61  ;;  %v3996_v60 = vld [vmem:[#allocation7 + $0x400] ss:$24 sps:$4 sm:$0xff]   ;;  %v3999_v61 = vld [vmem:[#allocation8 + $0x3f0] ss:$24 sps:$4 sm:$0xff]  }
 0x11b   :  { %2368 = vmatprep.subr.bf16.mxu1 %v3935_v62 }
 0x11d   :  { %2328 = vmatpush1.bf16.msra.mxu0 %v3930_v63  ;;  %v4004_v63 = vld [vmem:[#allocation7 + $0x3d4] ss:$24 sps:$4 sm:$0xff]  }
 0x11e   :  { %2369 = vmatpush1.bf16.msra.mxu1 %v3933_v0  ;;  %2329 = vmatprep.subr.bf16.mxu0 %v3938_v2  ;;  %v4007_v0 = vld [vmem:[#allocation8 + $0x3c4] ss:$24 sps:$4 sm:$0xff]  }
 0x11f   :  { %2370 = vmatprep.subr.bf16.mxu1 %v3941_v3  ;;  %v4002_v3 = vld [vmem:[#allocation7 + $0x3d0] ss:$24 sps:$4 sm:$0xff]  }
 0x121   :  { %2330 = vmatpush2.bf16.msra.mxu0 %v3936_v4  ;;  %v4005_v4 = vld [vmem:[#allocation8 + $0x3c0] ss:$24 sps:$4 sm:$0xff]  }
 0x122   :  { %2371 = vmatpush2.bf16.msra.mxu1 %v3939_v5  ;;  %2331 = vmatprep.subr.bf16.mxu0 %v3944_v6  ;;  %v4013_v5 = vld [vmem:[#allocation8 + $0x394] ss:$24 sps:$4 sm:$0xff]   ;;  %v4008_v6 = vld [vmem:[#allocation7 + $0x3a0] ss:$24 sps:$4 sm:$0xff]  }
 0x123   :  { %2372 = vmatprep.subr.bf16.mxu1 %v3947_v7  ;;  %v4011_v7 = vld [vmem:[#allocation8 + $0x390] ss:$24 sps:$4 sm:$0xff]  }
 0x125   :  { %2332 = vmatpush2.bf16.msra.mxu0 %v3942_v8  ;;  %v4016_v8 = vld [vmem:[#allocation7 + $0x374] ss:$24 sps:$4 sm:$0xff]  }
 0x126   :  { %2373 = vmatpush2.bf16.msra.mxu1 %v3945_v9  ;;  %2333 = vmatprep.subr.bf16.mxu0 %v3950_v11  ;;  %v4019_v9 = vld [vmem:[#allocation8 + $0x364] ss:$24 sps:$4 sm:$0xff]   ;;  %v4014_v11 = vld [vmem:[#allocation7 + $0x370] ss:$24 sps:$4 sm:$0xff]  }
 0x127   :  { %2374 = vmatprep.subr.bf16.mxu1 %v3953_v12  ;;  %v4017_v12 = vld [vmem:[#allocation8 + $0x360] ss:$24 sps:$4 sm:$0xff]  }
 0x129   :  { %2334 = vmatpush2.bf16.msra.mxu0 %v3948_v13  ;;  %v4022_v13 = vld [vmem:[#allocation7 + $0x344] ss:$24 sps:$4 sm:$0xff]  }
 0x12a   :  { %2375 = vmatpush2.bf16.msra.mxu1 %v3951_v14  ;;  %2335 = vmatprep.subr.bf16.mxu0 %v3956_v15  ;;  %v4025_v14 = vld [vmem:[#allocation8 + $0x334] ss:$24 sps:$4 sm:$0xff]   ;;  %v4020_v15 = vld [vmem:[#allocation7 + $0x340] ss:$24 sps:$4 sm:$0xff]  }
 0x12b   :  { %2376 = vmatprep.subr.bf16.mxu1 %v3959_v17  ;;  %v4023_v17 = vld [vmem:[#allocation8 + $0x330] ss:$24 sps:$4 sm:$0xff]  }
 0x12d   :  { %2336 = vmatpush2.bf16.msra.mxu0 %v3954_v18  ;;  %v4028_v18 = vld [vmem:[#allocation7 + $0x314] ss:$24 sps:$4 sm:$0xff]  }
 0x12e   :  { %2377 = vmatpush2.bf16.msra.mxu1 %v3957_v19  ;;  %2337 = vmatprep.subr.bf16.mxu0 %v3962_v20  ;;  %v4031_v19 = vld [vmem:[#allocation8 + $0x304] ss:$24 sps:$4 sm:$0xff]   ;;  %v4026_v20 = vld [vmem:[#allocation7 + $0x310] ss:$24 sps:$4 sm:$0xff]  }
 0x12f   :  { %2378 = vmatprep.subr.bf16.mxu1 %v3965_v22  ;;  %v4029_v22 = vld [vmem:[#allocation8 + $0x300] ss:$24 sps:$4 sm:$0xff]  }
 0x131   :  { %2338 = vmatpush2.bf16.msra.mxu0 %v3960_v23  ;;  %v4034_v23 = vld [vmem:[#allocation7 + $0x5e4] ss:$24 sps:$4 sm:$0xff]  }
 0x132   :  { %2379 = vmatpush2.bf16.msra.mxu1 %v3963_v24  ;;  %2339 = vmatprep.subr.bf16.mxu0 %v3968_v25  ;;  %v4037_v24 = vld [vmem:[#allocation8 + $0x5d4] ss:$24 sps:$4 sm:$0xff]   ;;  %v4032_v25 = vld [vmem:[#allocation7 + $0x5e0] ss:$24 sps:$4 sm:$0xff]  }
 0x133   :  { %2380 = vmatprep.subr.bf16.mxu1 %v3971_v26  ;;  %v4035_v26 = vld [vmem:[#allocation8 + $0x5d0] ss:$24 sps:$4 sm:$0xff]  }
 0x135   :  { %2340 = vmatpush2.bf16.msra.mxu0 %v3966_v27  ;;  %v4040_v27 = vld [vmem:[#allocation7 + $0x5b4] ss:$24 sps:$4 sm:$0xff]  }
 0x136   :  { %2381 = vmatpush2.bf16.msra.mxu1 %v3969_v28  ;;  %2341 = vmatprep.subr.bf16.mxu0 %v3974_v29  ;;  %v4043_v28 = vld [vmem:[#allocation8 + $0x5a4] ss:$24 sps:$4 sm:$0xff]   ;;  %v4038_v29 = vld [vmem:[#allocation7 + $0x5b0] ss:$24 sps:$4 sm:$0xff]  }
 0x137   :  { %2382 = vmatprep.subr.bf16.mxu1 %v3977_v30  ;;  %v4041_v30 = vld [vmem:[#allocation8 + $0x5a0] ss:$24 sps:$4 sm:$0xff]  }
 0x139   :  { %2342 = vmatpush2.bf16.msra.mxu0 %v3972_v31  ;;  %v4046_v31 = vld [vmem:[#allocation7 + $0x584] ss:$24 sps:$4 sm:$0xff]  }
 0x13a   :  { %2383 = vmatpush2.bf16.msra.mxu1 %v3975_v32  ;;  %2343 = vmatprep.subr.bf16.mxu0 %v3980_v33  ;;  %v4049_v32 = vld [vmem:[#allocation8 + $0x574] ss:$24 sps:$4 sm:$0xff]   ;;  %v4044_v33 = vld [vmem:[#allocation7 + $0x580] ss:$24 sps:$4 sm:$0xff]  }
 0x13b   :  { %2384 = vmatprep.subr.bf16.mxu1 %v3983_v34  ;;  %v4047_v34 = vld [vmem:[#allocation8 + $0x570] ss:$24 sps:$4 sm:$0xff]  }
 0x13d   :  { %2344 = vmatpush2.bf16.msra.mxu0 %v3978_v35  ;;  %v4052_v35 = vld [vmem:[#allocation7 + $0x554] ss:$24 sps:$4 sm:$0xff]  }
 0x13e   :  { %2385 = vmatpush2.bf16.msra.mxu1 %v3981_v38  ;;  %2395 = vmatprep.subr.bf16.mxu0 %v3986_v42  ;;  %v4055_v38 = vld [vmem:[#allocation8 + $0x544] ss:$24 sps:$4 sm:$0xff]   ;;  %v4050_v42 = vld [vmem:[#allocation7 + $0x550] ss:$24 sps:$4 sm:$0xff]  }
 0x13f   :  { %2929 = vmatprep.subr.bf16.mxu1 %v3989_v41  ;;  %v4053_v41 = vld [vmem:[#allocation8 + $0x540] ss:$24 sps:$4 sm:$0xff]  }
 0x140   :  { %v4495_v49 = vpop.f32.mrf.mxu0  ;;  %2346 = vmatmul.mubr.bf16.vlgmr.msra.gmra.mxu0 %v4453_v10 }
 0x141   :  { %2387 = vmatmul.mubr.bf16.vlgmr.msra.gmra.mxu1 %v4453_v10  ;;  %v4499_v50 = vpop.f32.mrf.mxu1  ;;  %2396 = vmatpush1.bf16.msra.mxu0 %v3984_v44  ;;  %v4058_v44 = vld [vmem:[#allocation7 + $0x524] ss:$24 sps:$4 sm:$0xff]  }
 0x142   :  { %2930 = vmatpush1.bf16.msra.mxu1 %v3987_v21  ;;  %v4501_v53 = vpop.f32.mrf.mxu0  ;;  %2397 = vmatprep.subr.bf16.mxu0 %v3992_v45  ;;  %v4061_v21 = vld [vmem:[#allocation8 + $0x514] ss:$24 sps:$4 sm:$0xff]   ;;  %v4056_v45 = vld [vmem:[#allocation7 + $0x520] ss:$24 sps:$4 sm:$0xff]  }
 0x143   :  { %2931 = vmatprep.subr.bf16.mxu1 %v3995_v47  ;;  %v4503_v57 = vpop.f32.mrf.mxu1  ;;  %2427 = vmatprep.mubr.bf16.mxu0 %v4445_v55  ;;  %v4010_v55 = vld [vmem:[#allocation7 + $0x3a4] ss:$24 sps:$4 sm:$0xff]   ;;  %v4059_v47 = vld [vmem:[#allocation8 + $0x510] ss:$24 sps:$4 sm:$0xff]  }
 0x144   :  { %2961 = vmatprep.mubr.bf16.mxu1 %v4493_v48  ;;  %v1046_v58 = vpop.f32.mrf.mxu0 }
 0x145   :  { %v1087_v59 = vpop.f32.mrf.mxu1  ;;  %2398 = vmatpush1.bf16.msra.mxu0 %v3990_v51  ;;  %v4064_v51 = vld [vmem:[#allocation7 + $0x4f4] ss:$24 sps:$4 sm:$0xff]   ;;  %v4070_v58 = vld [vmem:[#allocation7 + $0x4c4] ss:$24 sps:$4 sm:$0xff]  }
 0x146   :  { %2932 = vmatpush1.bf16.msra.mxu1 %v3993_v52  ;;  %v1047_v62 = vpop.f32.mrf.mxu0  ;;  %2399 = vmatprep.subr.bf16.mxu0 %v3998_v54  ;;  %v4067_v52 = vld [vmem:[#allocation8 + $0x4e4] ss:$24 sps:$4 sm:$0xff]   ;;  %v4062_v54 = vld [vmem:[#allocation7 + $0x4f0] ss:$24 sps:$4 sm:$0xff]   ;;  %v4073_v59 = vld [vmem:[#allocation8 + $0x4b4] ss:$24 sps:$4 sm:$0xff]  }
 0x147   :  { %2933 = vmatprep.subr.bf16.mxu1 %v4001_v56  ;;  %v1088_v2 = vpop.f32.mrf.mxu1  ;;  %v4065_v56 = vld [vmem:[#allocation8 + $0x4e0] ss:$24 sps:$4 sm:$0xff]   ;;  %v4076_v62 = vld [vmem:[#allocation7 + $0x494] ss:$24 sps:$4 sm:$0xff]  }
 0x148   :  { %v4074_v2 = vld [vmem:[#allocation7 + $0x490] ss:$24 sps:$4 sm:$0xff]  }
 0x149   :  { %2400 = vmatpush1.bf16.msra.mxu0 %v3996_v60  ;;  %v4068_v60 = vld [vmem:[#allocation7 + $0x4c0] ss:$24 sps:$4 sm:$0xff]  }
 0x14a   :  { %2934 = vmatpush1.bf16.msra.mxu1 %v3999_v61  ;;  %2401 = vmatprep.subr.bf16.mxu0 %v4004_v63  ;;  %v4071_v61 = vld [vmem:[#allocation8 + $0x4b0] ss:$24 sps:$4 sm:$0xff]   ;;  %v4079_v63 = vld [vmem:[#allocation8 + $0x484] ss:$24 sps:$4 sm:$0xff]  }
 0x14b   :  { %2935 = vmatprep.subr.bf16.mxu1 %v4007_v0  ;;  %v4509_v0 = vrot.slane %v4485_v39, %v4450_v1  ;;  %v4088_v39 = vld [vmem:[#allocation8 + $0x42c] ss:$24 sps:$4 sm:$0xff]  }
 0x14d   :  { %2402 = vmatpush1.bf16.msra.mxu0 %v4002_v3  ;;  %v4077_v3 = vld [vmem:[#allocation8 + $0x480] ss:$24 sps:$4 sm:$0xff]  }
 0x14e   :  { %2936 = vmatpush1.bf16.msra.mxu1 %v4005_v4  ;;  %2403 = vmatprep.subr.bf16.mxu0 %v4010_v55  ;;  %v4082_v4 = vld [vmem:[#allocation8 + $0x45c] ss:$24 sps:$4 sm:$0xff]  }
 0x14f   :  { %2937 = vmatprep.subr.bf16.mxu1 %v4013_v5  ;;  %v4085_v55 = vld [vmem:[#allocation8 + $0x464] ss:$24 sps:$4 sm:$0xff]   ;;  %v4513_v5 = vpack.c.bf16 %v4509_v0, %v4509_v0 }
 0x151   :  { %2404 = vmatpush1.bf16.msra.mxu0 %v4008_v6  ;;  %v4080_v6 = vld [vmem:[#allocation8 + $0x458] ss:$24 sps:$4 sm:$0xff]  }
 0x152   :  { %2938 = vmatpush1.bf16.msra.mxu1 %v4011_v7  ;;  %2405 = vmatprep.subr.bf16.mxu0 %v4016_v8  ;;  %v4083_v7 = vld [vmem:[#allocation8 + $0x460] ss:$24 sps:$4 sm:$0xff]   ;;  %v4091_v8 = vld [vmem:[#allocation8 + $0x434] ss:$24 sps:$4 sm:$0xff]  }
 0x153   :  { %2939 = vmatprep.subr.bf16.mxu1 %v4019_v9 }
 0x155   :  { %2406 = vmatpush1.bf16.msra.mxu0 %v4014_v11 }
 0x156   :  { %2940 = vmatpush1.bf16.msra.mxu1 %v4017_v12  ;;  %2407 = vmatprep.subr.bf16.mxu0 %v4022_v13  ;;  %v4086_v12 = vld [vmem:[#allocation8 + $0x428] ss:$24 sps:$4 sm:$0xff]  }
 0x157   :  { %2941 = vmatprep.subr.bf16.mxu1 %v4025_v14  ;;  %v4089_v13 = vld [vmem:[#allocation8 + $0x430] ss:$24 sps:$4 sm:$0xff]  }
 0x159   :  { %2408 = vmatpush1.bf16.msra.mxu0 %v4020_v15 }
 0x15a   :  { %2942 = vmatpush1.bf16.msra.mxu1 %v4023_v17  ;;  %2409 = vmatprep.subr.bf16.mxu0 %v4028_v18  ;;  %v4094_v17 = vld [vmem:[#allocation8 + $0x3fc] ss:$24 sps:$4 sm:$0xff]  }
 0x15b   :  { %2943 = vmatprep.subr.bf16.mxu1 %v4031_v19  ;;  %v4097_v18 = vld [vmem:[#allocation8 + $0x404] ss:$24 sps:$4 sm:$0xff]  }
 0x15d   :  { %2410 = vmatpush1.bf16.msra.mxu0 %v4026_v20  ;;  %v4092_v20 = vld [vmem:[#allocation8 + $0x3f8] ss:$24 sps:$4 sm:$0xff]  }
 0x15e   :  { %2944 = vmatpush1.bf16.msra.mxu1 %v4029_v22  ;;  %2411 = vmatprep.subr.bf16.mxu0 %v4034_v23  ;;  %v4095_v22 = vld [vmem:[#allocation8 + $0x400] ss:$24 sps:$4 sm:$0xff]  }
 0x15f   :  { %2945 = vmatprep.subr.bf16.mxu1 %v4037_v24  ;;  %v4100_v24 = vld [vmem:[#allocation8 + $0x3cc] ss:$24 sps:$4 sm:$0xff]  }
 0x161   :  { %2412 = vmatpush2.bf16.msra.mxu0 %v4032_v25  ;;  %v4103_v25 = vld [vmem:[#allocation8 + $0x3d4] ss:$24 sps:$4 sm:$0xff]  }
 0x162   :  { %2946 = vmatpush2.bf16.msra.mxu1 %v4035_v26  ;;  %2413 = vmatprep.subr.bf16.mxu0 %v4040_v27  ;;  %v4098_v27 = vld [vmem:[#allocation8 + $0x3c8] ss:$24 sps:$4 sm:$0xff]  }
 0x163   :  { %2947 = vmatprep.subr.bf16.mxu1 %v4043_v28  ;;  %v4101_v28 = vld [vmem:[#allocation8 + $0x3d0] ss:$24 sps:$4 sm:$0xff]  }
 0x165   :  { %2414 = vmatpush2.bf16.msra.mxu0 %v4038_v29  ;;  %v4106_v29 = vld [vmem:[#allocation8 + $0x39c] ss:$24 sps:$4 sm:$0xff]  }
 0x166   :  { %2948 = vmatpush2.bf16.msra.mxu1 %v4041_v30  ;;  %2415 = vmatprep.subr.bf16.mxu0 %v4046_v31  ;;  %v4104_v30 = vld [vmem:[#allocation8 + $0x398] ss:$24 sps:$4 sm:$0xff]  }
 0x167   :  { %2949 = vmatprep.subr.bf16.mxu1 %v4049_v32  ;;  %v4107_v31 = vld [vmem:[#allocation8 + $0x3a0] ss:$24 sps:$4 sm:$0xff]   ;;  %v4112_v32 = vld [vmem:[#allocation8 + $0x36c] ss:$24 sps:$4 sm:$0xff]  }
 0x169   :  { %2416 = vmatpush2.bf16.msra.mxu0 %v4044_v33  ;;  %v4115_v33 = vld [vmem:[#allocation8 + $0x374] ss:$24 sps:$4 sm:$0xff]  }
 0x16a   :  { %2950 = vmatpush2.bf16.msra.mxu1 %v4047_v34  ;;  %2417 = vmatprep.subr.bf16.mxu0 %v4052_v35  ;;  %v4527_v34 = vld [vmem:[#allocation10] sm:$0x3f] }
 0x16b   :  { %2951 = vmatprep.subr.bf16.mxu1 %v4055_v38  ;;  %v4110_v35 = vld [vmem:[#allocation8 + $0x368] ss:$24 sps:$4 sm:$0xff]  }
 0x16c   :  { %v4113_v38 = vld [vmem:[#allocation8 + $0x370] ss:$24 sps:$4 sm:$0xff]  }
 0x16d   :  { %2418 = vmatpush2.bf16.msra.mxu0 %v4050_v42  ;;  %v4118_v42 = vld [vmem:[#allocation8 + $0x33c] ss:$24 sps:$4 sm:$0xff]  }
 0x16e   :  { %2952 = vmatpush2.bf16.msra.mxu1 %v4053_v41  ;;  %2419 = vmatprep.subr.bf16.mxu0 %v4058_v44  ;;  %v4121_v41 = vld [vmem:[#allocation8 + $0x344] ss:$24 sps:$4 sm:$0xff]   ;;  %v981_v44 = vrot.slane %v4527_v34, %v4450_v1 }
 0x16f   :  { %2953 = vmatprep.subr.bf16.mxu1 %v4061_v21  ;;  %v985_v21 = vrot.slane %v4527_v34, %v4442_v46 }
 0x171   :  { %2420 = vmatpush2.bf16.msra.mxu0 %v4056_v45  ;;  %v4116_v45 = vld [vmem:[#allocation8 + $0x338] ss:$24 sps:$4 sm:$0xff]  }
 0x172   :  { %2954 = vmatpush2.bf16.msra.mxu1 %v4059_v47  ;;  %2421 = vmatprep.subr.bf16.mxu0 %v4064_v51  ;;  %v4119_v47 = vld [vmem:[#allocation8 + $0x340] ss:$24 sps:$4 sm:$0xff]   ;;  %v4124_v51 = vld [vmem:[#allocation8 + $0x30c] ss:$24 sps:$4 sm:$0xff]  }
 0x173   :  { %2955 = vmatprep.subr.bf16.mxu1 %v4067_v52  ;;  %v4127_v52 = vld [vmem:[#allocation8 + $0x314] ss:$24 sps:$4 sm:$0xff]  }
 0x175   :  { %2422 = vmatpush2.bf16.msra.mxu0 %v4062_v54  ;;  %v1043_v54 = vadd.f32 %v4495_v49, %v981_v44  ;;  %v4136_v49 = vld [vmem:[#allocation8 + $0x5ac] ss:$24 sps:$4 sm:$0xff]   ;;  %v4170_v44 = vld [vmem:[#allocation8 + $0x488] ss:$24 sps:$4 sm:$0xff]  }
 0x176   :  { %2956 = vmatpush2.bf16.msra.mxu1 %v4065_v56  ;;  %2423 = vmatprep.subr.bf16.mxu0 %v4070_v58  ;;  %v1045_v56 = vadd.f32 %v4501_v53, %v985_v21  ;;  %v4139_v53 = vld [vmem:[#allocation8 + $0x5b4] ss:$24 sps:$4 sm:$0xff]   ;;  %v4173_v21 = vld [vmem:[#allocation8 + $0x490] ss:$24 sps:$4 sm:$0xff]  }
 0x177   :  { %2957 = vmatprep.subr.bf16.mxu1 %v4073_v59  ;;  %v4122_v59 = vld [vmem:[#allocation8 + $0x308] ss:$24 sps:$4 sm:$0xff]  }
 0x179   :  { %2424 = vmatpush2.bf16.msra.mxu0 %v4068_v60  ;;  %v4125_v60 = vld [vmem:[#allocation8 + $0x310] ss:$24 sps:$4 sm:$0xff]  }
 0x17a   :  { %2958 = vmatpush2.bf16.msra.mxu1 %v4071_v61  ;;  %2425 = vmatprep.subr.bf16.mxu0 %v4076_v62  ;;  %v4130_v61 = vld [vmem:[#allocation8 + $0x5dc] ss:$24 sps:$4 sm:$0xff]  }
 0x17b   :  { %2959 = vmatprep.subr.bf16.mxu1 %v4079_v63  ;;  %v4133_v62 = vld [vmem:[#allocation8 + $0x5e4] ss:$24 sps:$4 sm:$0xff]  }
 0x17d   :  { %2426 = vmatpush2.bf16.msra.mxu0 %v4074_v2 }
 0x17e   :  { %2960 = vmatpush2.bf16.msra.mxu1 %v4077_v3  ;;  %2970 = vmatprep.subr.bf16.mxu0 %v4082_v4  ;;  %v4128_v3 = vld [vmem:[#allocation8 + $0x5d8] ss:$24 sps:$4 sm:$0xff]  }
 0x17f   :  { %3011 = vmatprep.subr.bf16.mxu1 %v4085_v55  ;;  %v4131_v4 = vld [vmem:[#allocation8 + $0x5e0] ss:$24 sps:$4 sm:$0xff]  }
 0x180   :  { %v4515_v9 = vpop.f32.mrf.mxu0  ;;  %2428 = vmatmul.mubr.bf16.vlgmr.msra.gmra.mxu0 %v4453_v10 }
 0x181   :  { %v4517_v11 = vpop.f32.mrf.mxu1  ;;  %2962 = vmatmul.mubr.bf16.vlgmr.msra.gmra.mxu1 %v4513_v5  ;;  %2971 = vmatpush1.bf16.msra.mxu0 %v4080_v6  ;;  %v4134_v6 = vld [vmem:[#allocation8 + $0x5a8] ss:$24 sps:$4 sm:$0xff]  }
 0x182   :  { %3012 = vmatpush1.bf16.msra.mxu1 %v4083_v7  ;;  %v4521_v14 = vpop.f32.mrf.mxu0  ;;  %2972 = vmatprep.subr.bf16.mxu0 %v4088_v39  ;;  %v1747_v58 = vadd.f32 %v4517_v11, %v1043_v54  ;;  %v4137_v7 = vld [vmem:[#allocation8 + $0x5b0] ss:$24 sps:$4 sm:$0xff]   ;;  %v4142_v39 = vld [vmem:[#allocation8 + $0x57c] ss:$24 sps:$4 sm:$0xff]  }
 0x183   :  { %v4523_v15 = vpop.f32.mrf.mxu1  ;;  %3013 = vmatprep.subr.bf16.mxu1 %v4091_v8  ;;  %3002 = vmatprep.mubr.bf16.mxu0 %v4493_v48  ;;  %v4145_v8 = vld [vmem:[#allocation8 + $0x584] ss:$24 sps:$4 sm:$0xff]   ;;  %v4140_v11 = vld [vmem:[#allocation8 + $0x578] ss:$24 sps:$4 sm:$0xff]  }
 0x184   :  { %3043 = vmatprep.mubr.bf16.mxu1 %v4493_v48  ;;  %v1128_v19 = vpop.f32.mrf.mxu0  ;;  %v4109_v48 = vld [vmem:[#allocation8 + $0x3a4] ss:$24 sps:$4 sm:$0xff]   ;;  %v1748_v63 = vadd.f32 %v4523_v15, %v1045_v56  ;;  %v3386_v2 = vmul.f32 -1.442695, %v1747_v58  ;;  %v4151_v15 = vld [vmem:[#allocation8 + $0x554] ss:$24 sps:$4 sm:$0xff]  }
 0x185   :  { %v1662_v10 = vpop.f32.mrf.mxu1  ;;  %2973 = vmatpush1.bf16.msra.mxu0 %v4086_v12  ;;  %v4143_v12 = vld [vmem:[#allocation8 + $0x580] ss:$24 sps:$4 sm:$0xff]   ;;  %v4154_v19 = vld [vmem:[#allocation8 + $0x51c] ss:$24 sps:$4 sm:$0xff]  }
 0x186   :  { %3014 = vmatpush1.bf16.msra.mxu1 %v4089_v13  ;;  %v1129_v23 = vpop.f32.mrf.mxu0  ;;  %2974 = vmatprep.subr.bf16.mxu0 %v4094_v17  ;;  %v3387_v55 = vmul.f32 -1.442695, %v1748_v63  ;;  %4176 = vpow2.f32 %v3386_v2  ;;  %v4148_v13 = vld [vmem:[#allocation8 + $0x54c] ss:$24 sps:$4 sm:$0xff]   ;;  %v4146_v17 = vld [vmem:[#allocation8 + $0x548] ss:$24 sps:$4 sm:$0xff]  }
 0x187   :  { %3015 = vmatprep.subr.bf16.mxu1 %v4097_v18  ;;  %v1663_v26 = vpop.f32.mrf.mxu1  ;;  %v4149_v18 = vld [vmem:[#allocation8 + $0x550] ss:$24 sps:$4 sm:$0xff]   ;;  %v4157_v10 = vld [vmem:[#allocation8 + $0x524] ss:$24 sps:$4 sm:$0xff]  }
 0x188   :  { %4178 = vpow2.f32 %v3387_v55 }
 0x189   :  { %2975 = vmatpush1.bf16.msra.mxu0 %v4092_v20  ;;  %v4152_v20 = vld [vmem:[#allocation8 + $0x518] ss:$24 sps:$4 sm:$0xff]  }
 0x18a   :  { %3016 = vmatpush1.bf16.msra.mxu1 %v4095_v22  ;;  %2976 = vmatprep.subr.bf16.mxu0 %v4100_v24  ;;  %v4155_v22 = vld [vmem:[#allocation8 + $0x520] ss:$24 sps:$4 sm:$0xff]   ;;  %v4160_v24 = vld [vmem:[#allocation8 + $0x4ec] ss:$24 sps:$4 sm:$0xff]  }
 0x18b   :  { %3017 = vmatprep.subr.bf16.mxu1 %v4103_v25  ;;  %v4163_v25 = vld [vmem:[#allocation8 + $0x4f4] ss:$24 sps:$4 sm:$0xff]  }
 0x18d   :  { %2977 = vmatpush1.bf16.msra.mxu0 %v4098_v27 }
 0x18e   :  { %3018 = vmatpush1.bf16.msra.mxu1 %v4101_v28  ;;  %2978 = vmatprep.subr.bf16.mxu0 %v4106_v29  ;;  %v4158_v28 = vld [vmem:[#allocation8 + $0x4e8] ss:$24 sps:$4 sm:$0xff]  }
 0x18f   :  { %3019 = vmatprep.subr.bf16.mxu1 %v4109_v48  ;;  %v4161_v29 = vld [vmem:[#allocation8 + $0x4f0] ss:$24 sps:$4 sm:$0xff]   ;;  %v4166_v48 = vld [vmem:[#allocation8 + $0x4bc] ss:$24 sps:$4 sm:$0xff]  }
 0x191   :  { %2979 = vmatpush1.bf16.msra.mxu0 %v4104_v30  ;;  %v4169_v30 = vld [vmem:[#allocation8 + $0x4c4] ss:$24 sps:$4 sm:$0xff]  }
 0x192   :  { %3020 = vmatpush1.bf16.msra.mxu1 %v4107_v31  ;;  %2980 = vmatprep.subr.bf16.mxu0 %v4112_v32  ;;  %v4164_v32 = vld [vmem:[#allocation8 + $0x4b8] ss:$24 sps:$4 sm:$0xff]  }
 0x193   :  { %3021 = vmatprep.subr.bf16.mxu1 %v4115_v33  ;;  %v4177_v23 = vpop.eup %4176  ;;  %v4167_v33 = vld [vmem:[#allocation8 + $0x4c0] ss:$24 sps:$4 sm:$0xff]  }
 0x194   :  { %v1755_v27 = vadd.f32 1.0, %v4177_v23 }
 0x195   :  { %2981 = vmatpush1.bf16.msra.mxu0 %v4110_v35  ;;  %v4179_v26 = vpop.eup %4178  ;;  %v4172_v35 = vld [vmem:[#allocation8 + $0x48c] ss:$24 sps:$4 sm:$0xff]  }
 0x196   :  { %3022 = vmatpush1.bf16.msra.mxu1 %v4113_v38  ;;  %2982 = vmatprep.subr.bf16.mxu0 %v4118_v42  ;;  %v1756_v31 = vadd.f32 1.0, %v4179_v26  ;;  %4180 = vrcp.f32 %v1755_v27  ;;  %v4175_v38 = vld [vmem:[#allocation8 + $0x494] ss:$24 sps:$4 sm:$0xff]   ;;  %v988_v42 = vsub.s32 2, %v4439_v40 }
 0x197   :  { %3023 = vmatprep.subr.bf16.mxu1 %v4121_v41  ;;  %v992_v41 = vsub.s32 3, %v4439_v40 }
 0x198   :  { %4182 = vrcp.f32 %v1756_v31 }
 0x199   :  { %2983 = vmatpush1.bf16.msra.mxu0 %v4116_v45  ;;  %v996_v45 = vsub.s32 4, %v4439_v40  ;;  %v993_v54 = vrot.slane %v4527_v34, %v992_v41 }
 0x19a   :  { %3024 = vmatpush1.bf16.msra.mxu1 %v4119_v47  ;;  %2984 = vmatprep.subr.bf16.mxu0 %v4124_v51  ;;  %v482_v47 = vld [vmem:[%s4619_s5] sm:$0x3]  ;;  %v989_v51 = vrot.slane %v4527_v34, %v988_v42 }
 0x19b   :  { %3025 = vmatprep.subr.bf16.mxu1 %v4127_v52  ;;  %v1000_v52 = vsub.s32 5, %v4439_v40  ;;  %v1779_v56 = vrot.slane %v482_v47, %v4450_v1  ;;  %v997_v58 = vrot.slane %v4527_v34, %v996_v45  ;;  %v1086_v2 = vadd.f32 %v4503_v57, %v993_v54 }
 0x19d   :  { %2985 = vmatpush1.bf16.msra.mxu0 %v4122_v59  ;;  %v1084_v59 = vadd.f32 %v4499_v50, %v989_v51 }
 0x19e   :  { %3026 = vmatpush1.bf16.msra.mxu1 %v4125_v60  ;;  %2986 = vmatprep.subr.bf16.mxu0 %v4130_v61  ;;  %v1783_v60 = vrot.slane %v482_v47, %v4442_v46  ;;  %v1001_v61 = vrot.slane %v4527_v34, %v1000_v52 }
 0x19f   :  { %3027 = vmatprep.subr.bf16.mxu1 %v4133_v62 }
 0x1a1   :  { %2987 = vmatpush2.bf16.msra.mxu0 %v4128_v3 }
 0x1a2   :  { %3028 = vmatpush2.bf16.msra.mxu1 %v4131_v4  ;;  %2988 = vmatprep.subr.bf16.mxu0 %v4136_v49 }
 0x1a3   :  { %3029 = vmatprep.subr.bf16.mxu1 %v4139_v53  ;;  %v4181_v49 = vpop.eup %4180  ;;  %v1125_v53 = vadd.f32 %v4515_v9, %v997_v58 }
 0x1a5   :  { %2989 = vmatpush2.bf16.msra.mxu0 %v4134_v6  ;;  %v4183_v34 = vpop.eup %4182 }
 0x1a6   :  { %3030 = vmatpush2.bf16.msra.mxu1 %v4137_v7  ;;  %2990 = vmatprep.subr.bf16.mxu0 %v4142_v39 }
 0x1a7   :  { %3031 = vmatprep.subr.bf16.mxu1 %v4145_v8 }
 0x1a9   :  { %2991 = vmatpush2.bf16.msra.mxu0 %v4140_v11  ;;  %v1127_v11 = vadd.f32 %v4521_v14, %v1001_v61  ;;  %v4377_v14 = vmov 1966171168  }
 0x1aa   :  { %3032 = vmatpush2.bf16.msra.mxu1 %v4143_v12  ;;  %2992 = vmatprep.subr.bf16.mxu0 %v4148_v13 }
 0x1ab   :  { %3033 = vmatprep.subr.bf16.mxu1 %v4151_v15 }
 0x1ad   :  { %2993 = vmatpush2.bf16.msra.mxu0 %v4146_v17 }
 0x1ae   :  { %3034 = vmatpush2.bf16.msra.mxu1 %v4149_v18  ;;  %2994 = vmatprep.subr.bf16.mxu0 %v4154_v19 }
 0x1af   :  { %3035 = vmatprep.subr.bf16.mxu1 %v4157_v10 }
 0x1b1   :  { %2995 = vmatpush2.bf16.msra.mxu0 %v4152_v20 }
 0x1b2   :  { %3036 = vmatpush2.bf16.msra.mxu1 %v4155_v22  ;;  %2996 = vmatprep.subr.bf16.mxu0 %v4160_v24  ;;  %v3113_v24 = vunpack.c.l.s4 %v4377_v14 }
 0x1b3   :  { %3037 = vmatprep.subr.bf16.mxu1 %v4163_v25 }
 0x1b5   :  { %2997 = vmatpush2.bf16.msra.mxu0 %v4158_v28 }
 0x1b6   :  { %3038 = vmatpush2.bf16.msra.mxu1 %v4161_v29  ;;  %2998 = vmatprep.subr.bf16.mxu0 %v4166_v48 }
 0x1b7   :  { %3039 = vmatprep.subr.bf16.mxu1 %v4169_v30  ;;  %v3114_v30 = vunpack.c.0.s8 %v3113_v24 }
 0x1b9   :  { %2999 = vmatpush2.bf16.msra.mxu0 %v4164_v32 }
 0x1ba   :  { %3040 = vmatpush2.bf16.msra.mxu1 %v4167_v33  ;;  %3000 = vmatprep.subr.bf16.mxu0 %v4172_v35 }
 0x1bb   :  { %3041 = vmatprep.subr.bf16.mxu1 %v4175_v38 }
 0x1bd   :  { %3001 = vmatpush2.bf16.msra.mxu0 %v4170_v44  ;;  %v4567_v44 = vsub.s32 %v3114_v30, %v4439_v40 }
 0x1be   :  { %3042 = vmatpush2.bf16.msra.mxu1 %v4173_v21 }
 0x1c0   :  { %v1699_v62 = vpop.f32.mrf.mxu0  ;;  %3003 = vmatmul.mubr.bf16.vlgmr.msra.gmra.mxu0 %v4513_v5 }
 0x1c1   :  { %v1740_v63 = vpop.f32.mrf.mxu1  ;;  %3044 = vmatmul.mubr.bf16.vlgmr.msra.gmra.mxu1 %v4513_v5  ;;  %v1761_v3 = vadd.f32 %v1699_v62, %v1084_v59 }
 0x1c2   :  { %v1786_v4 = vadd.f32 %v1779_v56, %v1740_v63  ;;  %v1701_v50 = vpop.f32.mrf.mxu0 }
 0x1c3   :  { %v1742_v55 = vpop.f32.mrf.mxu1  ;;  %v3388_v6 = vmul.f32 -1.442695, %v1761_v3  ;;  %v1762_v39 = vadd.f32 %v1701_v50, %v1086_v2 }
 0x1c4   :  { %v1788_v7 = vmul.f32 %v4181_v49, %v1786_v4  ;;  %v1787_v8 = vadd.f32 %v1783_v60, %v1742_v55  ;;  %v1703_v12 = vpop.f32.mrf.mxu0 }
 0x1c5   :  { %v1744_v13 = vpop.f32.mrf.mxu1  ;;  %4184 = vpow2.f32 %v3388_v6  ;;  %v3389_v15 = vmul.f32 -1.442695, %v1762_v39  ;;  %v481_v6 = vld [vmem:[#allocation10 + $0x6] sm:$0x3f] }
 0x1c6   :  { %v1790_v5 = vadd.f32 %v1788_v7, %v1125_v53  ;;  %v1789_v57 = vmul.f32 %v4183_v34, %v1787_v8  ;;  %v1704_v17 = vpop.f32.mrf.mxu0  ;;  %v2286_v7 = vrot.slane %v481_v6, %v4450_v1  ;;  %v2290_v39 = vrot.slane %v481_v6, %v4442_v46 }
 0x1c7   :  { %v1745_v18 = vpop.f32.mrf.mxu1  ;;  %4186 = vpow2.f32 %v3389_v15  ;;  %v2306_v24 = vrot.slane %v481_v6, %v1000_v52 }
 0x1c8   :  { %v1791_v19 = vadd.f32 %v1789_v57, %v1127_v11 }
 0x1d2   :  { %v4185_v9 = vpop.eup %4184 }
 0x1d3   :  { %v1769_v10 = vadd.f32 1.0, %v4185_v9  ;;  %v2294_v9 = vrot.slane %v481_v6, %v988_v42 }
 0x1d4   :  { %v4187_v20 = vpop.eup %4186 }
 0x1d5   :  { %4188 = vrcp.f32 %v1769_v10  ;;  %v1770_v22 = vadd.f32 1.0, %v4187_v20  ;;  %v2298_v10 = vrot.slane %v481_v6, %v992_v41 }
 0x1d6   :  { %4190 = vtanh.f32 %v1790_v5 }
 0x1d7   :  { %4192 = vrcp.f32 %v1770_v22  ;;  %v2302_v22 = vrot.slane %v481_v6, %v996_v45 }
 0x1d8   :  { %4194 = vtanh.f32 %v1791_v19  ;;  %v483_v19 = vld [vmem:[%s4619_s5 + $0x2] sm:$0x3]  ;;  %s4378_s5 = smov [#allocation12]  }
 0x1d9   :  { %v3084_v20 = vrot.slane %v483_v19, %v4450_v1  ;;  %v3088_v14 = vrot.slane %v483_v19, %v4442_v46  ;;  %s3176_s10 = sshll.u32 %s4378_s5, 4  ;;  %s3177_s10 = int_to_ptr.vmem [resolvable:$true] %s3176_s10 }
 0x1da   :  { %s4316_s13 = scalar_lea.vmem %s3177_s10, 64  ;;  %p4321_p12 = scmp.lt.s32.totalorder %s3177_s10, %s3177_s10 }
 0x1db   :  { %p4317_p11 = scmp.ne.s32.totalorder %s3177_s10, %s4316_s13  ;;  %p4322_p13 = scmp.lt.s32.totalorder %s4316_s13, %s4316_s13 }
 0x1dd   :  { %p4323_p0 = por %p4322_p13, %p4321_p12 }
 0x1df   :  { %p4324_p1 = pnand %p4323_p0, %p4317_p11 }
 0x1e2   :  { %v4189_v23 = vpop.eup %4188 }
 0x1e3   :  { %v1794_v25 = vsub.f32 1.0, %v4189_v23  ;;  %v4191_v26 = vpop.eup %4190  ;;  %v1798_v29 = vmul.f32 %v4189_v23, %v4471_v16 }
 0x1e4   :  { %v4193_v27 = vpop.eup %4192 }
 0x1e5   :  { %v1796_v28 = vmul.f32 %v4191_v26, %v1794_v25  ;;  %v1795_v48 = vsub.f32 1.0, %v4193_v27  ;;  %v4195_v31 = vpop.eup %4194  ;;  %v1799_v35 = vmul.f32 %v4193_v27, %v4462_v37 }
 0x1e7   :  { %v1800_v32 = vadd.f32 %v1798_v29, %v1796_v28  ;;  %v1797_v33 = vmul.f32 %v4195_v31, %v1795_v48 }
 0x1e9   :  { %v1801_v38 = vadd.f32 %v1799_v35, %v1797_v33 }
 0x1eb   :  { %v3111_v21 = vcombine.low %v1800_v32, %v1801_v38 }
 0x1ed   :  { %v4570_v47 = vrot.slane %v3111_v21, %v4567_v44 }
 0x1ef   :  { %v3125_v16 = vrot.slane %v4570_v47, %v4567_v44 }
 0x1f1   :  { %3147 = vst.msk [vmem:[#allocation12] sm:$0x3] %vm4573_vm0, %v3125_v16 }
 0x200   :  { %v2347_v37 = vpop.f32.mrf.mxu0 }
 0x201   :  { %v2388_v54 = vpop.f32.mrf.mxu1  ;;  %v2348_v8 = vadd.f32 %v2347_v37, %v2286_v7 }
 0x202   :  { %v2349_v56 = vpop.f32.mrf.mxu0  ;;  %v2389_v23 = vadd.f32 %v2388_v54, %v2294_v9 }
 0x203   :  { %v2390_v58 = vpop.f32.mrf.mxu1  ;;  %v2350_v34 = vadd.f32 %v2349_v56, %v2290_v39 }
 0x204   :  { %v2351_v59 = vpop.f32.mrf.mxu0  ;;  %v2391_v27 = vadd.f32 %v2390_v58, %v2298_v10 }
 0x205   :  { %v2392_v60 = vpop.f32.mrf.mxu1 }
 0x206   :  { %v2352_v61 = vpop.f32.mrf.mxu0 }
 0x207   :  { %v2393_v62 = vpop.f32.mrf.mxu1 }
 0x240   :  { %v2429_v63 = vpop.f32.mrf.mxu0 }
 0x241   :  { %v2963_v2 = vpop.f32.mrf.mxu1  ;;  %v2430_v48 = vadd.f32 %v2429_v63, %v2302_v22 }
 0x242   :  { %v2431_v3 = vpop.f32.mrf.mxu0  ;;  %v3052_v11 = vadd.f32 %v2963_v2, %v2348_v8 }
 0x243   :  { %v2965_v4 = vpop.f32.mrf.mxu1  ;;  %v2432_v35 = vadd.f32 %v2431_v3, %v2306_v24 }
 0x244   :  { %v2433_v49 = vpop.f32.mrf.mxu0  ;;  %v3053_v12 = vadd.f32 %v2965_v4, %v2350_v34  ;;  %v3582_v13 = vmul.f32 -1.442695, %v3052_v11 }
 0x245   :  { %v2967_v53 = vpop.f32.mrf.mxu1 }
 0x246   :  { %v2434_v50 = vpop.f32.mrf.mxu0  ;;  %v3583_v5 = vmul.f32 -1.442695, %v3053_v12  ;;  %4196 = vpow2.f32 %v3582_v13 }
 0x247   :  { %v2968_v55 = vpop.f32.mrf.mxu1 }
 0x248   :  { %4198 = vpow2.f32 %v3583_v5 }
 0x253   :  { %v4197_v15 = vpop.eup %4196 }
 0x254   :  { %v3060_v17 = vadd.f32 1.0, %v4197_v15 }
 0x255   :  { %v4199_v57 = vpop.eup %4198 }
 0x256   :  { %v3061_v18 = vadd.f32 1.0, %v4199_v57  ;;  %4200 = vrcp.f32 %v3060_v17 }
 0x258   :  { %4202 = vrcp.f32 %v3061_v18 }
 0x263   :  { %v4201_v42 = vpop.eup %4200 }
 0x265   :  { %v4203_v45 = vpop.eup %4202 }
 0x280   :  { %v3004_v25 = vpop.f32.mrf.mxu0 }
 0x281   :  { %v3045_v26 = vpop.f32.mrf.mxu1  ;;  %v3066_v28 = vadd.f32 %v3004_v25, %v2389_v23 }
 0x282   :  { %v3091_v29 = vadd.f32 %v3084_v20, %v3045_v26  ;;  %v3006_v30 = vpop.f32.mrf.mxu0 }
 0x283   :  { %v3047_v41 = vpop.f32.mrf.mxu1  ;;  %v3584_v31 = vmul.f32 -1.442695, %v3066_v28  ;;  %v3067_v32 = vadd.f32 %v3006_v30, %v2391_v27 }
 0x284   :  { %v3093_v1 = vmul.f32 %v4201_v42, %v3091_v29  ;;  %v3092_v33 = vadd.f32 %v3088_v14, %v3047_v41  ;;  %v3008_v38 = vpop.f32.mrf.mxu0 }
 0x285   :  { %v3049_v46 = vpop.f32.mrf.mxu1  ;;  %4204 = vpow2.f32 %v3584_v31  ;;  %v3585_v52 = vmul.f32 -1.442695, %v3067_v32 }
 0x286   :  { %v3095_v40 = vadd.f32 %v3093_v1, %v2430_v48  ;;  %v3094_v21 = vmul.f32 %v4203_v45, %v3092_v33  ;;  %v3009_v16 = vpop.f32.mrf.mxu0 }
 0x287   :  { %v3050_v37 = vpop.f32.mrf.mxu1  ;;  %4206 = vpow2.f32 %v3585_v52 }
 0x288   :  { %v3096_v54 = vadd.f32 %v3094_v21, %v2432_v35 }
 0x292   :  { %v4205_v56 = vpop.eup %4204 }
 0x293   :  { %v3074_v58 = vadd.f32 1.0, %v4205_v56 }
 0x294   :  { %v4207_v59 = vpop.eup %4206 }
 0x295   :  { %4208 = vrcp.f32 %v3074_v58  ;;  %v3075_v60 = vadd.f32 1.0, %v4207_v59 }
 0x296   :  { %4210 = vtanh.f32 %v3095_v40 }
 0x297   :  { %4212 = vrcp.f32 %v3075_v60 }
 0x298   :  { %4214 = vtanh.f32 %v3096_v54 }
 0x2a2   :  { %v4209_v61 = vpop.eup %4208 }
 0x2a3   :  { %v3099_v62 = vsub.f32 1.0, %v4209_v61  ;;  %v4211_v63 = vpop.eup %4210  ;;  %v3103_v4 = vmul.f32 %v4209_v61, %v4509_v0 }
 0x2a4   :  { %v4213_v2 = vpop.eup %4212 }
 0x2a5   :  { %v3101_v3 = vmul.f32 %v4211_v63, %v3099_v62  ;;  %v3100_v49 = vsub.f32 1.0, %v4213_v2  ;;  %v4215_v53 = vpop.eup %4214  ;;  %v3104_v6 = vmul.f32 %v4213_v2, %v4489_v43 }
 0x2a7   :  { %v3105_v50 = vadd.f32 %v3103_v4, %v3101_v3  ;;  %v3102_v55 = vmul.f32 %v4215_v53, %v3100_v49 }
 0x2a9   :  { %v3106_v7 = vadd.f32 %v3104_v6, %v3102_v55 }
 0x2ab   :  { %v3126_v39 = vcombine.low %v3105_v50, %v3106_v7 }
 0x2ad   :  { %v3133_v8 = vrot.slane %v3126_v39, %v4567_v44 }
 0x2af   :  { %v3149_v34 = vcombine.low %v4570_v47, %v3133_v8  ;;  %v3140_v11 = vrot.slane %v3133_v8, %v4567_v44 }
 0x2b1   :  { %v3156_v0 = vrot.slane %v3149_v34, %v4567_v44  ;;  %3148 = vst.msk [vmem:[#allocation12 + $0x2] sm:$0x3] %vm4573_vm0, %v3140_v11 }
 0x2b2   :  { %4327 = shalt.err (!%p4324_p1)
}
 0x2b3   :  { %3182 = dma.vmem_to_hbm [thread:$0]  %s3177_s10, 64, %s4621_s7, [#allocation13], %s4367_s27, %s4367_s27, %s4368_s28   ;;  %3160 = vst.msk [vmem:[#allocation11] sm:$0xf] %vm3158_vm1, %v3156_v0 }
 0x2b4   :  { %s4336_s16 = scalar_lea.vmem %s3168_s12, 64  ;;  %p4341_p3 = scmp.lt.s32.totalorder %s3168_s12, %s3168_s12 }
 0x2b5   :  { %p4337_p2 = scmp.ne.s32.totalorder %s3168_s12, %s4336_s16  ;;  %p4342_p4 = scmp.lt.s32.totalorder %s4336_s16, %s4336_s16 }
 0x2b7   :  { %p4343_p5 = por %p4342_p4, %p4341_p3 }
 0x2b9   :  { %p4344_p6 = pnand %p4343_p5, %p4337_p2 }
 0x2bb   :  { %4347 = shalt.err (!%p4344_p6)
}
 0x2bc   :  { %3170 = dma.vmem_to_hbm [thread:$0]  %s3168_s12, 64, %s4620_s6, [#allocation4]  }
 0x2bd   :  { %4362 = dma.done.wait [#allocation4], 64  }
 0x2be   :  { %4363 = vsyncadd [#allocation4], 4294967232 }
 0x2bf   :  { %4364 = dma.done.wait [#allocation13], 64  }
 0x2c0   :  { %4365 = vsyncadd [#allocation13], 4294967232 }
 0x2c1   :  { %3189 = vsyncpa [#allocation3], 1 }
 0x2c2   :  { %3190 = vsyncpa [#allocation6], 1 }
 0x2c3   :  { %3191 = vsyncpa [#allocation9], 1 }
 0x2c4   :  { %3192 = vsyncpa [#allocation4], 1 }
 0x2c5   :  { %3193 = vsyncpa [#allocation13], 1 }

</bundles_post_ra>
